<compile_context>
chip_gen: v7x
topology: tpu7x:2x2x1
jax: 0.10.0
libtpu: 0.0.40
codegen_flags: <defaults>
</compile_context>

<pallas_src>
import functools

import jax
import jax.numpy as jnp
from jax.experimental import pallas as pl
from jax.experimental.pallas import tpu as pltpu

NUM_HEADS = 8
LN_EPS = 1e-5
MATMUL_DTYPE = jnp.bfloat16


def _layer_norm(x, gamma, beta):
    # x: (M, E); gamma/beta: (1, E)
    mean = jnp.mean(x, axis=-1, keepdims=True)
    var = jnp.mean((x - mean) ** 2, axis=-1, keepdims=True)
    return (x - mean) * jax.lax.rsqrt(var + LN_EPS) * gamma + beta


def rg_transformer_kernel(
    x_ref,       # (block_b*S, E) f32   flattened batch-block of Matrix rows
    ln_ref,      # (2, E)         f32   row 0 = gamma, row 1 = beta
    wqkv_ref,    # (E, 3E)        bf16  [wq | wk | wv]
    bqkv_ref,    # (1, 3E)        f32   [bq | bk | bv]
    wogm_ref,    # (E, 3E)        bf16  [wo | wg | wm]
    bogm_ref,    # (1, 3E)        f32   [bo | bg | bm]
    mask_k_ref,  # (E, H*S)       bf16  block-diagonal head mask for K
    mask_v_ref,  # (H*S, E)       bf16  block-diagonal head mask for V
    out_ref,     # (block_b*S, E) f32
    attn_scr,    # (block_b*S, E) f32   VMEM scratch for attention results
    *, block_b, seq, embed,
):
    Bb, S, E = block_b, seq, embed
    H = NUM_HEADS
    dh = E // H
    scale = 1.0 / float(dh) ** 0.5
    cdt = wqkv_ref.dtype                      # matmul operand dtype (bf16)

    gamma = ln_ref[0:1, :]
    beta = ln_ref[1:2, :]
    x = x_ref[...]                            # (M, E) f32, M = Bb*S

    # ---- ln = self.layer_norm(Matrix) ----
    ln = _layer_norm(x, gamma, beta)

    # ---- fused Q/K/V projection: one (M,E)@(E,3E) matmul ----
    qkv = jnp.dot(ln.astype(cdt), wqkv_ref[...],
                  preferred_element_type=jnp.float32) + bqkv_ref[...]
    q = qkv[:, 0 * E:1 * E].astype(cdt)
    k = qkv[:, 1 * E:2 * E].astype(cdt)
    v = qkv[:, 2 * E:3 * E].astype(cdt)

    mask_k = mask_k_ref[...]
    mask_v = mask_v_ref[...]

    # ---- multi-head attention, per batch row, results into VMEM scratch ----
    # Small-head regime: all H heads via one wide (S, H*S) score matmul over a
    # block-diagonal head layout; P@V and the softmax denominator fused into a
    # single (S, H*S) @ (H*S, 2E) matmul.  Large-head regime (dh*S >= 128):
    # per-head matmuls on lane-aligned head slices.
    use_blockdiag = (dh * S) < 128
    for b in range(Bb):                       # static, small trip count
        rows = slice(b * S, (b + 1) * S)
        qb, kb, vb = q[rows, :], k[rows, :], v[rows, :]
        if use_blockdiag:
            k_wide = jnp.concatenate([kb.T] * H, axis=1) * mask_k        # (E, H*S)
            s = jnp.dot(qb, k_wide,
                        preferred_element_type=jnp.float32) * scale      # (S, H*S)
            # Row-global max: one scalar per row, so it cancels exactly in the
            # num/den ratio below (valid stabilizer even though not per-head).
            p = jnp.exp(s - jnp.max(s, axis=-1, keepdims=True))
            v_tall = jnp.concatenate([vb] * H, axis=0) * mask_v          # (H*S, E)
            vm = jnp.concatenate([v_tall, mask_v], axis=1)               # (H*S, 2E)
            numden = jnp.dot(p.astype(cdt), vm,
                             preferred_element_type=jnp.float32)         # (S, 2E)
            num = numden[:, 0:E]
            den = numden[:, E:2 * E]
            attn_scr[rows, :] = (num / den).astype(attn_scr.dtype)       # exact recip
        else:
            for h in range(H):                # static; dh >= 16, lane-sized slices
                cols = slice(h * dh, (h + 1) * dh)
                qh, kh, vh = qb[:, cols], kb[:, cols], vb[:, cols]
                s = jnp.dot(qh, kh.T,
                            preferred_element_type=jnp.float32) * scale  # (S, S)
                p = jax.nn.softmax(s, axis=-1)
                attn_scr[rows, cols] = jnp.dot(
                    p.astype(cdt), vh,
                    preferred_element_type=jnp.float32).astype(attn_scr.dtype)

    attn = attn_scr[...].astype(cdt)          # (M, E)

    w_o = wogm_ref[:, 0 * E:1 * E]
    w_g = wogm_ref[:, 1 * E:2 * E]
    w_m = wogm_ref[:, 2 * E:3 * E]
    b_o = bogm_ref[:, 0 * E:1 * E]
    b_g = bogm_ref[:, 1 * E:2 * E]
    b_m = bogm_ref[:, 2 * E:3 * E]

    # ---- rmha = MHA output projection ----
    rmha = jnp.dot(attn, w_o, preferred_element_type=jnp.float32) + b_o
    # ---- gate0 = MLPGate(Matrix); gate1 = gate0*rmha + Matrix ----
    gate0 = jax.nn.sigmoid(
        jnp.dot(x.astype(cdt), w_g, preferred_element_type=jnp.float32) + b_g)
    gate1 = gate0 * rmha + x
    # ---- final = gate1 * layer_norm(MLP(gate1)) + gate1 ----
    mlp = jax.nn.sigmoid(
        jnp.dot(gate1.astype(cdt), w_m, preferred_element_type=jnp.float32) + b_m)
    final = gate1 * _layer_norm(mlp, gamma, beta) + gate1

    out_ref[...] = final.astype(out_ref.dtype)


def pack_params(params, matmul_dtype=MATMUL_DTYPE):
    """Host-side packing of the 14 parameter tensors into 5 fused arrays."""
    ln = jnp.stack([params["ln_gamma"][0], params["ln_beta"][0]],
                   axis=0).astype(jnp.float32)                               # (2, E)
    wqkv = jnp.concatenate([params["wq"], params["wk"], params["wv"]],
                           axis=1).astype(matmul_dtype)                      # (E, 3E)
    bqkv = jnp.concatenate([params["bq"], params["bk"], params["bv"]],
                           axis=1).astype(jnp.float32)                       # (1, 3E)
    wogm = jnp.concatenate([params["wo"], params["wg"], params["wm"]],
                           axis=1).astype(matmul_dtype)                      # (E, 3E)
    bogm = jnp.concatenate([params["bo"], params["bg"], params["bm"]],
                           axis=1).astype(jnp.float32)                       # (1, 3E)
    return {"ln": ln, "wqkv": wqkv, "bqkv": bqkv, "wogm": wogm, "bogm": bogm}


def _head_masks(seq, embed, dtype):
    """Block-diagonal head masks for the wide-matmul attention formulation."""
    dh = embed // NUM_HEADS
    hs = NUM_HEADS * seq
    head_of_col = jnp.arange(embed) // dh          # (E,)  embed column -> head
    head_of_row = jnp.arange(hs) // seq            # (HS,) wide row     -> head
    mask_k = (head_of_col[:, None] == head_of_row[None, :]).astype(dtype)    # (E, HS)
    mask_v = mask_k.T                                                        # (HS, E)
    return mask_k, mask_v


def _tpu_hints():
    """(tensorcores_per_chip, vmem_limit_bytes) with conservative fallbacks."""
    vmem_phys = 64 * 1024 * 1024                   # assume v7x-sized VMEM if unknown
    n_tc = 1
    try:
        info = pltpu.get_tpu_info()
        vmem_phys = int(getattr(info, "vmem_capacity_bytes", vmem_phys))
    except Exception:
        pass
    try:
        kind = jax.devices()[0].device_kind.lower()
        if "v7" in kind or "7x" in kind:
            n_tc = 2                               # v7x: 2 TensorCores per chip
    except Exception:
        pass
    vmem_limit = min(vmem_phys * 3 // 4, 100 * 1024 * 1024)   # leave headroom
    return n_tc, vmem_limit


def _pick_block_b(batch, seq, n_tc):
    """Rows per grid step: grid=1 on single-TC chips; split only on v7x when each
    step still has enough rows (>=256) to amortize per-step pipeline overhead."""
    if (n_tc >= 2 and batch % 2 == 0
            and (batch // 2) * seq >= 256 and ((batch // 2) * seq) % 8 == 0):
        return batch // 2
    return batch


def rg_transformer(matrix, packed, *, block_b=None):
    """matrix: (B, S, E) float32; packed: output of pack_params()."""
    B, S, E = matrix.shape
    assert E % NUM_HEADS == 0
    H = NUM_HEADS
    HS = H * S

    n_tc, vmem_limit = _tpu_hints()
    if block_b is None:
        block_b = _pick_block_b(B, S, n_tc)
    if B % block_b != 0 or (block_b != B and (block_b * S) % 8 != 0):
        block_b = B
    grid_b = B // block_b
    m_blk = block_b * S

    # Host-side flatten: rows ordered (batch-major, seq) -> (B*S, E).
    x2d = matrix.reshape(B * S, E)
    mask_k, mask_v = _head_masks(S, E, packed["wqkv"].dtype)

    flops = (2 * B * S * E * 3 * E                          # fused QKV
             + B * 6 * S * E * H * S                        # scores + fused num|den
             + 3 * 2 * B * S * E * E)                       # wo, wg, wm projections
    transcendentals = (B * S * H * S                        # exp
                       + 2 * B * S * E                      # sigmoids
                       + B * S * E                          # softmax divide
                       + 2 * B * S)                         # rsqrt (2 layer norms)
    bytes_accessed = (4 * 2 * B * S * E                               # x in + out
                      + 2 * (2 * E * 3 * E + E * HS + HS * E)         # bf16 W + masks
                      + 4 * (2 * E + 2 * 3 * E))                      # f32 ln + biases

    def _run(weight_buffers):
        def _const(shape):
            if weight_buffers is None:
                return pl.BlockSpec(shape, lambda i: (0, 0))
            return pl.BlockSpec(shape, lambda i: (0, 0),
                                pipeline_mode=pl.Buffered(weight_buffers))

        return pl.pallas_call(
            functools.partial(rg_transformer_kernel,
                              block_b=block_b, seq=S, embed=E),
            out_shape=jax.ShapeDtypeStruct((B * S, E), matrix.dtype),
            grid_spec=pltpu.PrefetchScalarGridSpec(
                num_scalar_prefetch=0,
                grid=(grid_b,),
                in_specs=[
                    pl.BlockSpec((m_blk, E), lambda i: (i, 0)),   # x rows
                    _const((2, E)),                               # ln gamma/beta
                    _const((E, 3 * E)),                           # wq|wk|wv
                    _const((1, 3 * E)),                           # bq|bk|bv
                    _const((E, 3 * E)),                           # wo|wg|wm
                    _const((1, 3 * E)),                           # bo|bg|bm
                    _const((E, HS)),                              # mask_k
                    _const((HS, E)),                              # mask_v
                ],
                out_specs=pl.BlockSpec((m_blk, E), lambda i: (i, 0)),
                scratch_shapes=[pltpu.VMEM((m_blk, E), jnp.float32)],
            ),
            compiler_params=pltpu.CompilerParams(
                dimension_semantics=(
                    ("parallel",) if grid_b > 1 else ("arbitrary",)),
                vmem_limit_bytes=int(vmem_limit),
            ),
            cost_estimate=pl.CostEstimate(
                flops=int(flops),
                transcendentals=int(transcendentals),
                bytes_accessed=int(bytes_accessed),
            ),
        )(x2d, packed["ln"], packed["wqkv"], packed["bqkv"],
          packed["wogm"], packed["bogm"], mask_k, mask_v)

    try:
        out2d = _run(1)        # single-buffer the constant weight/mask inputs
    except Exception:          # pl.Buffered(1) unsupported here -> default buffering
        out2d = _run(None)
    return out2d.reshape(B, S, E)


def init_params(key, embed):
    """Deterministic synthetic parameter init (no checkpoint loading)."""
    keys = jax.random.split(key, 12)
    scale = 1.0 / jnp.sqrt(embed)

    def lin_w(k):
        return jax.random.normal(k, (embed, embed), jnp.float32) * scale

    def lin_b(k):
        return jax.random.normal(k, (1, embed), jnp.float32) * 0.01

    return {
        "ln_gamma": jnp.ones((1, embed), jnp.float32),
        "ln_beta": jnp.zeros((1, embed), jnp.float32),
        "wq": lin_w(keys[0]), "bq": lin_b(keys[1]),
        "wk": lin_w(keys[2]), "bk": lin_b(keys[3]),
        "wv": lin_w(keys[4]), "bv": lin_b(keys[5]),
        "wo": lin_w(keys[6]), "bo": lin_b(keys[7]),
        "wg": lin_w(keys[8]), "bg": lin_b(keys[9]),
        "wm": lin_w(keys[10]), "bm": lin_b(keys[11]),
    }


def rg_transformer_ref(matrix, params):
    """Pure-JAX f32 reference used to sanity-check the kernel."""
    x = matrix
    g, b = params["ln_gamma"], params["ln_beta"]

    def ln_fn(t):
        m = jnp.mean(t, -1, keepdims=True)
        v = jnp.mean((t - m) ** 2, -1, keepdims=True)
        return (t - m) * jax.lax.rsqrt(v + LN_EPS) * g + b

    ln = ln_fn(x)
    q = ln @ params["wq"] + params["bq"]
    k = ln @ params["wk"] + params["bk"]
    v = ln @ params["wv"] + params["bv"]
    B, S, E = x.shape
    dh = E // NUM_HEADS
    qh = q.reshape(B, S, NUM_HEADS, dh)
    kh = k.reshape(B, S, NUM_HEADS, dh)
    vh = v.reshape(B, S, NUM_HEADS, dh)
    s = jnp.einsum("bqhd,bkhd->bhqk", qh, kh) / jnp.sqrt(dh)
    p = jax.nn.softmax(s, axis=-1)
    attn = jnp.einsum("bhqk,bkhd->bqhd", p, vh).reshape(B, S, E)
    rmha = attn @ params["wo"] + params["bo"]
    gate0 = jax.nn.sigmoid(x @ params["wg"] + params["bg"])
    gate1 = gate0 * rmha + x
    mlp = jax.nn.sigmoid(gate1 @ params["wm"] + params["bm"])
    return gate1 * ln_fn(mlp) + gate1


if __name__ == "__main__":
    # dimension = (total_games, batch_size, embed); Matrix is [batch, seq, embed]
    total_games, batch_size, embed = 8, 2, 32
    key = jax.random.PRNGKey(0)
    k_x, k_p = jax.random.split(key)

    matrix = jax.random.normal(k_x, (batch_size, total_games, embed), jnp.float32)
    params = init_params(k_p, embed)
    packed = pack_params(params)

    out = jax.block_until_ready(rg_transformer(matrix, packed))
    ref = rg_transformer_ref(matrix, params)

    assert out.shape == (batch_size, total_games, embed)
    # Matmul operands are bf16 (with f32 MXU accumulation) per the perf review;
    # vs. the pure-f32 reference this gives ~1e-2-scale deviations (amplified
    # mainly by the second LayerNorm).  The softmax now uses an exact divide.
    assert jnp.allclose(out, ref, atol=2e-2, rtol=2e-2), (
        float(jnp.max(jnp.abs(out - ref)))
    )
    print("KERNEL_OK")
</pallas_src>

<mosaic_0001>
module attributes {stable_mosaic.version = 11 : i64} {
  func.func @rg_transformer_kernel(%arg0: i32, %arg1: memref<16x32xf32, #tpu.memory_space<vmem>>, %arg2: memref<2x32xf32, #tpu.memory_space<vmem>>, %arg3: memref<32x96xbf16, #tpu.memory_space<vmem>>, %arg4: memref<1x96xf32, #tpu.memory_space<vmem>>, %arg5: memref<32x96xbf16, #tpu.memory_space<vmem>>, %arg6: memref<1x96xf32, #tpu.memory_space<vmem>>, %arg7: memref<32x64xbf16, #tpu.memory_space<vmem>>, %arg8: memref<64x32xbf16, #tpu.memory_space<vmem>>, %arg9: memref<16x32xf32, #tpu.memory_space<vmem>>, %arg10: memref<16x32xf32, #tpu.memory_space<vmem>>) attributes {dimension_semantics = [#tpu.dimension_semantics<arbitrary>], iteration_bounds = array<i64: 1>, scalar_prefetch = 0 : i64, scratch_operands = 1 : i64, tpu.core_type = #tpu.core_type<tc>, window_params = [{transform_indices = @transform_0, window_bounds = array<i64: 16, 32>}, {pipeline_mode = #tpu.pipeline_mode<synchronous>, transform_indices = @transform_1, window_bounds = array<i64: 2, 32>}, {pipeline_mode = #tpu.pipeline_mode<synchronous>, transform_indices = @transform_2, window_bounds = array<i64: 32, 96>}, {pipeline_mode = #tpu.pipeline_mode<synchronous>, transform_indices = @transform_3, window_bounds = array<i64: 1, 96>}, {pipeline_mode = #tpu.pipeline_mode<synchronous>, transform_indices = @transform_4, window_bounds = array<i64: 32, 96>}, {pipeline_mode = #tpu.pipeline_mode<synchronous>, transform_indices = @transform_5, window_bounds = array<i64: 1, 96>}, {pipeline_mode = #tpu.pipeline_mode<synchronous>, transform_indices = @transform_6, window_bounds = array<i64: 32, 64>}, {pipeline_mode = #tpu.pipeline_mode<synchronous>, transform_indices = @transform_7, window_bounds = array<i64: 64, 32>}, {transform_indices = @transform_8, window_bounds = array<i64: 16, 32>}]} {
    %c0 = arith.constant 0 : index
    %c0_0 = arith.constant 0 : index
    %0 = vector.load %arg2[%c0, %c0_0] : memref<2x32xf32, #tpu.memory_space<vmem>>, vector<1x32xf32>
    %c1 = arith.constant 1 : index
    %c0_1 = arith.constant 0 : index
    %1 = vector.load %arg2[%c1, %c0_1] : memref<2x32xf32, #tpu.memory_space<vmem>>, vector<1x32xf32>
    %c0_2 = arith.constant 0 : index
    %c0_3 = arith.constant 0 : index
    %2 = vector.load %arg1[%c0_2, %c0_3] : memref<16x32xf32, #tpu.memory_space<vmem>>, vector<16x32xf32>
    %cst = arith.constant dense<0.000000e+00> : vector<16xf32>
    %3 = vector.multi_reduction <add>, %2, %cst [1] : vector<16x32xf32> to vector<16xf32>
    %4 = vector.shape_cast %3 : vector<16xf32> to vector<16x1xf32>
    %cst_4 = arith.constant 3.200000e+01 : f32
    %5 = vector.broadcast %cst_4 : f32 to vector<16x1xf32>
    %6 = arith.divf %4, %5 : vector<16x1xf32>
    %7 = vector.broadcast %6 : vector<16x1xf32> to vector<16x32xf32>
    %8 = arith.subf %2, %7 : vector<16x32xf32>
    %9 = arith.mulf %8, %8 : vector<16x32xf32>
    %cst_5 = arith.constant dense<0.000000e+00> : vector<16xf32>
    %10 = vector.multi_reduction <add>, %9, %cst_5 [1] : vector<16x32xf32> to vector<16xf32>
    %11 = vector.shape_cast %10 : vector<16xf32> to vector<16x1xf32>
    %cst_6 = arith.constant 3.200000e+01 : f32
    %12 = vector.broadcast %cst_6 : f32 to vector<16x1xf32>
    %13 = arith.divf %11, %12 : vector<16x1xf32>
    %14 = vector.broadcast %6 : vector<16x1xf32> to vector<16x32xf32>
    %15 = arith.subf %2, %14 : vector<16x32xf32>
    %cst_7 = arith.constant 9.99999974E-6 : f32
    %16 = vector.broadcast %cst_7 : f32 to vector<16x1xf32>
    %17 = arith.addf %13, %16 : vector<16x1xf32>
    %18 = math.rsqrt %17 : vector<16x1xf32>
    %19 = vector.broadcast %18 : vector<16x1xf32> to vector<16x32xf32>
    %20 = arith.mulf %15, %19 : vector<16x32xf32>
    %21 = vector.broadcast %0 : vector<1x32xf32> to vector<16x32xf32>
    %22 = arith.mulf %20, %21 : vector<16x32xf32>
    %23 = vector.broadcast %1 : vector<1x32xf32> to vector<16x32xf32>
    %24 = arith.addf %22, %23 : vector<16x32xf32>
    %25 = arith.truncf %24 : vector<16x32xf32> to vector<16x32xbf16>
    %c0_8 = arith.constant 0 : index
    %c0_9 = arith.constant 0 : index
    %26 = vector.load %arg3[%c0_8, %c0_9] : memref<32x96xbf16, #tpu.memory_space<vmem>>, vector<32x96xbf16>
    %cst_10 = arith.constant dense<0.000000e+00> : vector<16x96xf32>
    %27 = tpu.matmul %25, %26, %cst_10 {dimension_numbers = #tpu.dot_dimension_numbers<[1], [0], [0], [1], [0, 0, 1, 1], [], []>} : vector<16x32xbf16>, vector<32x96xbf16>, vector<16x96xf32> -> vector<16x96xf32>
    %c0_11 = arith.constant 0 : index
    %c0_12 = arith.constant 0 : index
    %28 = vector.load %arg4[%c0_11, %c0_12] : memref<1x96xf32, #tpu.memory_space<vmem>>, vector<1x96xf32>
    %29 = vector.broadcast %28 : vector<1x96xf32> to vector<16x96xf32>
    %30 = arith.addf %27, %29 : vector<16x96xf32>
    %31 = vector.extract_strided_slice %30 {offsets = [0, 0], sizes = [16, 32], strides = [1, 1]} : vector<16x96xf32> to vector<16x32xf32>
    %32 = arith.truncf %31 : vector<16x32xf32> to vector<16x32xbf16>
    %33 = vector.extract_strided_slice %30 {offsets = [0, 32], sizes = [16, 32], strides = [1, 1]} : vector<16x96xf32> to vector<16x32xf32>
    %34 = arith.truncf %33 : vector<16x32xf32> to vector<16x32xbf16>
    %35 = vector.extract_strided_slice %30 {offsets = [0, 64], sizes = [16, 32], strides = [1, 1]} : vector<16x96xf32> to vector<16x32xf32>
    %36 = arith.truncf %35 : vector<16x32xf32> to vector<16x32xbf16>
    %c0_13 = arith.constant 0 : index
    %c0_14 = arith.constant 0 : index
    %37 = vector.load %arg7[%c0_13, %c0_14] : memref<32x64xbf16, #tpu.memory_space<vmem>>, vector<32x64xbf16>
    %c0_15 = arith.constant 0 : index
    %c0_16 = arith.constant 0 : index
    %38 = vector.load %arg8[%c0_15, %c0_16] : memref<64x32xbf16, #tpu.memory_space<vmem>>, vector<64x32xbf16>
    %39 = vector.extract_strided_slice %32 {offsets = [0, 0], sizes = [8, 32], strides = [1, 1]} : vector<16x32xbf16> to vector<8x32xbf16>
    %40 = vector.extract_strided_slice %34 {offsets = [0, 0], sizes = [8, 32], strides = [1, 1]} : vector<16x32xbf16> to vector<8x32xbf16>
    %41 = vector.extract_strided_slice %36 {offsets = [0, 0], sizes = [8, 32], strides = [1, 1]} : vector<16x32xbf16> to vector<8x32xbf16>
    %42 = tpu.transpose %40, [1, 0] : vector<8x32xbf16> -> vector<32x8xbf16>
    %43 = tpu.concatenate %42, %42, %42, %42, %42, %42, %42, %42 in 1 : vector<32x8xbf16>, vector<32x8xbf16>, vector<32x8xbf16>, vector<32x8xbf16>, vector<32x8xbf16>, vector<32x8xbf16>, vector<32x8xbf16>, vector<32x8xbf16> -> vector<32x64xbf16>
    %44 = arith.mulf %43, %37 : vector<32x64xbf16>
    %cst_17 = arith.constant dense<0.000000e+00> : vector<8x64xf32>
    %45 = tpu.matmul %39, %44, %cst_17 {dimension_numbers = #tpu.dot_dimension_numbers<[1], [0], [0], [1], [0, 0, 1, 1], [], []>} : vector<8x32xbf16>, vector<32x64xbf16>, vector<8x64xf32> -> vector<8x64xf32>
    %cst_18 = arith.constant 5.000000e-01 : f32
    %46 = vector.broadcast %cst_18 : f32 to vector<8x64xf32>
    %47 = arith.mulf %45, %46 : vector<8x64xf32>
    %cst_19 = arith.constant dense<0xFF800000> : vector<8xf32>
    %48 = vector.multi_reduction <maximumf>, %47, %cst_19 [1] : vector<8x64xf32> to vector<8xf32>
    %49 = vector.shape_cast %48 : vector<8xf32> to vector<8x1xf32>
    %50 = vector.broadcast %49 : vector<8x1xf32> to vector<8x64xf32>
    %51 = arith.subf %47, %50 : vector<8x64xf32>
    %52 = math.exp %51 : vector<8x64xf32>
    %53 = tpu.concatenate %41, %41, %41, %41, %41, %41, %41, %41 in 0 : vector<8x32xbf16>, vector<8x32xbf16>, vector<8x32xbf16>, vector<8x32xbf16>, vector<8x32xbf16>, vector<8x32xbf16>, vector<8x32xbf16>, vector<8x32xbf16> -> vector<64x32xbf16>
    %54 = arith.mulf %53, %38 : vector<64x32xbf16>
    %55 = tpu.concatenate %54, %38 in 1 : vector<64x32xbf16>, vector<64x32xbf16> -> vector<64x64xbf16>
    %56 = arith.truncf %52 : vector<8x64xf32> to vector<8x64xbf16>
    %cst_20 = arith.constant dense<0.000000e+00> : vector<8x64xf32>
    %57 = tpu.matmul %56, %55, %cst_20 {dimension_numbers = #tpu.dot_dimension_numbers<[1], [0], [0], [1], [0, 0, 1, 1], [], []>} : vector<8x64xbf16>, vector<64x64xbf16>, vector<8x64xf32> -> vector<8x64xf32>
    %58 = vector.extract_strided_slice %57 {offsets = [0, 0], sizes = [8, 32], strides = [1, 1]} : vector<8x64xf32> to vector<8x32xf32>
    %59 = vector.extract_strided_slice %57 {offsets = [0, 32], sizes = [8, 32], strides = [1, 1]} : vector<8x64xf32> to vector<8x32xf32>
    %60 = arith.divf %58, %59 : vector<8x32xf32>
    %c0_21 = arith.constant 0 : index
    %c0_22 = arith.constant 0 : index
    %61 = vector.load %arg10[%c0_21, %c0_22] : memref<16x32xf32, #tpu.memory_space<vmem>>, vector<8x32xf32>
    tpu.vector_store %arg10[%c0_21, %c0_22], %60 {strides = array<i32>} : memref<16x32xf32, #tpu.memory_space<vmem>>, vector<8x32xf32>,
    %62 = vector.extract_strided_slice %32 {offsets = [8, 0], sizes = [8, 32], strides = [1, 1]} : vector<16x32xbf16> to vector<8x32xbf16>
    %63 = vector.extract_strided_slice %34 {offsets = [8, 0], sizes = [8, 32], strides = [1, 1]} : vector<16x32xbf16> to vector<8x32xbf16>
    %64 = vector.extract_strided_slice %36 {offsets = [8, 0], sizes = [8, 32], strides = [1, 1]} : vector<16x32xbf16> to vector<8x32xbf16>
    %65 = tpu.transpose %63, [1, 0] : vector<8x32xbf16> -> vector<32x8xbf16>
    %66 = tpu.concatenate %65, %65, %65, %65, %65, %65, %65, %65 in 1 : vector<32x8xbf16>, vector<32x8xbf16>, vector<32x8xbf16>, vector<32x8xbf16>, vector<32x8xbf16>, vector<32x8xbf16>, vector<32x8xbf16>, vector<32x8xbf16> -> vector<32x64xbf16>
    %67 = arith.mulf %66, %37 : vector<32x64xbf16>
    %cst_23 = arith.constant dense<0.000000e+00> : vector<8x64xf32>
    %68 = tpu.matmul %62, %67, %cst_23 {dimension_numbers = #tpu.dot_dimension_numbers<[1], [0], [0], [1], [0, 0, 1, 1], [], []>} : vector<8x32xbf16>, vector<32x64xbf16>, vector<8x64xf32> -> vector<8x64xf32>
    %cst_24 = arith.constant 5.000000e-01 : f32
    %69 = vector.broadcast %cst_24 : f32 to vector<8x64xf32>
    %70 = arith.mulf %68, %69 : vector<8x64xf32>
    %cst_25 = arith.constant dense<0xFF800000> : vector<8xf32>
    %71 = vector.multi_reduction <maximumf>, %70, %cst_25 [1] : vector<8x64xf32> to vector<8xf32>
    %72 = vector.shape_cast %71 : vector<8xf32> to vector<8x1xf32>
    %73 = vector.broadcast %72 : vector<8x1xf32> to vector<8x64xf32>
    %74 = arith.subf %70, %73 : vector<8x64xf32>
    %75 = math.exp %74 : vector<8x64xf32>
    %76 = tpu.concatenate %64, %64, %64, %64, %64, %64, %64, %64 in 0 : vector<8x32xbf16>, vector<8x32xbf16>, vector<8x32xbf16>, vector<8x32xbf16>, vector<8x32xbf16>, vector<8x32xbf16>, vector<8x32xbf16>, vector<8x32xbf16> -> vector<64x32xbf16>
    %77 = arith.mulf %76, %38 : vector<64x32xbf16>
    %78 = tpu.concatenate %77, %38 in 1 : vector<64x32xbf16>, vector<64x32xbf16> -> vector<64x64xbf16>
    %79 = arith.truncf %75 : vector<8x64xf32> to vector<8x64xbf16>
    %cst_26 = arith.constant dense<0.000000e+00> : vector<8x64xf32>
    %80 = tpu.matmul %79, %78, %cst_26 {dimension_numbers = #tpu.dot_dimension_numbers<[1], [0], [0], [1], [0, 0, 1, 1], [], []>} : vector<8x64xbf16>, vector<64x64xbf16>, vector<8x64xf32> -> vector<8x64xf32>
    %81 = vector.extract_strided_slice %80 {offsets = [0, 0], sizes = [8, 32], strides = [1, 1]} : vector<8x64xf32> to vector<8x32xf32>
    %82 = vector.extract_strided_slice %80 {offsets = [0, 32], sizes = [8, 32], strides = [1, 1]} : vector<8x64xf32> to vector<8x32xf32>
    %83 = arith.divf %81, %82 : vector<8x32xf32>
    %c8 = arith.constant 8 : index
    %c0_27 = arith.constant 0 : index
    %84 = vector.load %arg10[%c8, %c0_27] : memref<16x32xf32, #tpu.memory_space<vmem>>, vector<8x32xf32>
    tpu.vector_store %arg10[%c8, %c0_27], %83 {strides = array<i32>} : memref<16x32xf32, #tpu.memory_space<vmem>>, vector<8x32xf32>,
    %c0_28 = arith.constant 0 : index
    %c0_29 = arith.constant 0 : index
    %85 = vector.load %arg10[%c0_28, %c0_29] : memref<16x32xf32, #tpu.memory_space<vmem>>, vector<16x32xf32>
    %86 = arith.truncf %85 : vector<16x32xf32> to vector<16x32xbf16>
    %c0_30 = arith.constant 0 : index
    %c0_31 = arith.constant 0 : index
    %87 = vector.load %arg5[%c0_30, %c0_31] : memref<32x96xbf16, #tpu.memory_space<vmem>>, vector<32x32xbf16>
    %c0_32 = arith.constant 0 : index
    %c32 = arith.constant 32 : index
    %88 = vector.load %arg5[%c0_32, %c32] : memref<32x96xbf16, #tpu.memory_space<vmem>>, vector<32x32xbf16>
    %c0_33 = arith.constant 0 : index
    %c64 = arith.constant 64 : index
    %89 = vector.load %arg5[%c0_33, %c64] : memref<32x96xbf16, #tpu.memory_space<vmem>>, vector<32x32xbf16>
    %c0_34 = arith.constant 0 : index
    %c0_35 = arith.constant 0 : index
    %90 = vector.load %arg6[%c0_34, %c0_35] : memref<1x96xf32, #tpu.memory_space<vmem>>, vector<1x32xf32>
    %c0_36 = arith.constant 0 : index
    %c32_37 = arith.constant 32 : index
    %91 = vector.load %arg6[%c0_36, %c32_37] : memref<1x96xf32, #tpu.memory_space<vmem>>, vector<1x32xf32>
    %c0_38 = arith.constant 0 : index
    %c64_39 = arith.constant 64 : index
    %92 = vector.load %arg6[%c0_38, %c64_39] : memref<1x96xf32, #tpu.memory_space<vmem>>, vector<1x32xf32>
    %cst_40 = arith.constant dense<0.000000e+00> : vector<16x32xf32>
    %93 = tpu.matmul %86, %87, %cst_40 {dimension_numbers = #tpu.dot_dimension_numbers<[1], [0], [0], [1], [0, 0, 1, 1], [], []>} : vector<16x32xbf16>, vector<32x32xbf16>, vector<16x32xf32> -> vector<16x32xf32>
    %94 = vector.broadcast %90 : vector<1x32xf32> to vector<16x32xf32>
    %95 = arith.addf %93, %94 : vector<16x32xf32>
    %96 = arith.truncf %2 : vector<16x32xf32> to vector<16x32xbf16>
    %cst_41 = arith.constant dense<0.000000e+00> : vector<16x32xf32>
    %97 = tpu.matmul %96, %88, %cst_41 {dimension_numbers = #tpu.dot_dimension_numbers<[1], [0], [0], [1], [0, 0, 1, 1], [], []>} : vector<16x32xbf16>, vector<32x32xbf16>, vector<16x32xf32> -> vector<16x32xf32>
    %98 = vector.broadcast %91 : vector<1x32xf32> to vector<16x32xf32>
    %99 = arith.addf %97, %98 : vector<16x32xf32>
    %100 = arith.negf %99 : vector<16x32xf32>
    %101 = math.exp %100 : vector<16x32xf32>
    %cst_42 = arith.constant 1.000000e+00 : f32
    %102 = vector.broadcast %cst_42 : f32 to vector<16x32xf32>
    %103 = arith.addf %102, %101 : vector<16x32xf32>
    %104 = arith.divf %102, %103 : vector<16x32xf32>
    %105 = arith.mulf %104, %95 : vector<16x32xf32>
    %106 = arith.addf %105, %2 : vector<16x32xf32>
    %107 = arith.truncf %106 : vector<16x32xf32> to vector<16x32xbf16>
    %cst_43 = arith.constant dense<0.000000e+00> : vector<16x32xf32>
    %108 = tpu.matmul %107, %89, %cst_43 {dimension_numbers = #tpu.dot_dimension_numbers<[1], [0], [0], [1], [0, 0, 1, 1], [], []>} : vector<16x32xbf16>, vector<32x32xbf16>, vector<16x32xf32> -> vector<16x32xf32>
    %109 = vector.broadcast %92 : vector<1x32xf32> to vector<16x32xf32>
    %110 = arith.addf %108, %109 : vector<16x32xf32>
    %111 = arith.negf %110 : vector<16x32xf32>
    %112 = math.exp %111 : vector<16x32xf32>
    %cst_44 = arith.constant 1.000000e+00 : f32
    %113 = vector.broadcast %cst_44 : f32 to vector<16x32xf32>
    %114 = arith.addf %113, %112 : vector<16x32xf32>
    %115 = arith.divf %113, %114 : vector<16x32xf32>
    %cst_45 = arith.constant dense<0.000000e+00> : vector<16xf32>
    %116 = vector.multi_reduction <add>, %115, %cst_45 [1] : vector<16x32xf32> to vector<16xf32>
    %117 = vector.shape_cast %116 : vector<16xf32> to vector<16x1xf32>
    %cst_46 = arith.constant 3.200000e+01 : f32
    %118 = vector.broadcast %cst_46 : f32 to vector<16x1xf32>
    %119 = arith.divf %117, %118 : vector<16x1xf32>
    %120 = vector.broadcast %119 : vector<16x1xf32> to vector<16x32xf32>
    %121 = arith.subf %115, %120 : vector<16x32xf32>
    %122 = arith.mulf %121, %121 : vector<16x32xf32>
    %cst_47 = arith.constant dense<0.000000e+00> : vector<16xf32>
    %123 = vector.multi_reduction <add>, %122, %cst_47 [1] : vector<16x32xf32> to vector<16xf32>
    %124 = vector.shape_cast %123 : vector<16xf32> to vector<16x1xf32>
    %cst_48 = arith.constant 3.200000e+01 : f32
    %125 = vector.broadcast %cst_48 : f32 to vector<16x1xf32>
    %126 = arith.divf %124, %125 : vector<16x1xf32>
    %127 = vector.broadcast %119 : vector<16x1xf32> to vector<16x32xf32>
    %128 = arith.subf %115, %127 : vector<16x32xf32>
    %cst_49 = arith.constant 9.99999974E-6 : f32
    %129 = vector.broadcast %cst_49 : f32 to vector<16x1xf32>
    %130 = arith.addf %126, %129 : vector<16x1xf32>
    %131 = math.rsqrt %130 : vector<16x1xf32>
    %132 = vector.broadcast %131 : vector<16x1xf32> to vector<16x32xf32>
    %133 = arith.mulf %128, %132 : vector<16x32xf32>
    %134 = vector.broadcast %0 : vector<1x32xf32> to vector<16x32xf32>
    %135 = arith.mulf %133, %134 : vector<16x32xf32>
    %136 = vector.broadcast %1 : vector<1x32xf32> to vector<16x32xf32>
    %137 = arith.addf %135, %136 : vector<16x32xf32>
    %138 = arith.mulf %106, %137 : vector<16x32xf32>
    %139 = arith.addf %138, %106 : vector<16x32xf32>
    %c0_50 = arith.constant 0 : index
    %c0_51 = arith.constant 0 : index
    %140 = vector.load %arg9[%c0_50, %c0_51] : memref<16x32xf32, #tpu.memory_space<vmem>>, vector<16x32xf32>
    tpu.vector_store %arg9[%c0_50, %c0_51], %139 {strides = array<i32>} : memref<16x32xf32, #tpu.memory_space<vmem>>, vector<16x32xf32>,
    return
  }
  func.func @transform_0(%arg0: i32) -> (i32, i32) {
    %c0_i32 = arith.constant 0 : i32
    %c0_i32_0 = arith.constant 0 : i32
    return %arg0, %c0_i32 : i32, i32
  }
  func.func @transform_1(%arg0: i32) -> (i32, i32) {
    %c0_i32 = arith.constant 0 : i32
    %c0_i32_0 = arith.constant 0 : i32
    %c0_i32_1 = arith.constant 0 : i32
    return %c0_i32, %c0_i32_0 : i32, i32
  }
  func.func @transform_2(%arg0: i32) -> (i32, i32) {
    %c0_i32 = arith.constant 0 : i32
    %c0_i32_0 = arith.constant 0 : i32
    %c0_i32_1 = arith.constant 0 : i32
    return %c0_i32, %c0_i32_0 : i32, i32
  }
  func.func @transform_3(%arg0: i32) -> (i32, i32) {
    %c0_i32 = arith.constant 0 : i32
    %c0_i32_0 = arith.constant 0 : i32
    %c0_i32_1 = arith.constant 0 : i32
    return %c0_i32, %c0_i32_0 : i32, i32
  }
  func.func @transform_4(%arg0: i32) -> (i32, i32) {
    %c0_i32 = arith.constant 0 : i32
    %c0_i32_0 = arith.constant 0 : i32
    %c0_i32_1 = arith.constant 0 : i32
    return %c0_i32, %c0_i32_0 : i32, i32
  }
  func.func @transform_5(%arg0: i32) -> (i32, i32) {
    %c0_i32 = arith.constant 0 : i32
    %c0_i32_0 = arith.constant 0 : i32
    %c0_i32_1 = arith.constant 0 : i32
    return %c0_i32, %c0_i32_0 : i32, i32
  }
  func.func @transform_6(%arg0: i32) -> (i32, i32) {
    %c0_i32 = arith.constant 0 : i32
    %c0_i32_0 = arith.constant 0 : i32
    %c0_i32_1 = arith.constant 0 : i32
    return %c0_i32, %c0_i32_0 : i32, i32
  }
  func.func @transform_7(%arg0: i32) -> (i32, i32) {
    %c0_i32 = arith.constant 0 : i32
    %c0_i32_0 = arith.constant 0 : i32
    %c0_i32_1 = arith.constant 0 : i32
    return %c0_i32, %c0_i32_0 : i32, i32
  }
  func.func @transform_8(%arg0: i32) -> (i32, i32) {
    %c0_i32 = arith.constant 0 : i32
    %c0_i32_0 = arith.constant 0 : i32
    return %arg0, %c0_i32 : i32, i32
  }
}

module attributes {stable_mosaic.version = 11 : i64} {
  func.func @rg_transformer_kernel(%arg0: i32, %arg1: memref<16x32xf32, #tpu.memory_space<vmem>>, %arg2: memref<2x32xf32, #tpu.memory_space<vmem>>, %arg3: memref<32x96xbf16, #tpu.memory_space<vmem>>, %arg4: memref<1x96xf32, #tpu.memory_space<vmem>>, %arg5: memref<32x96xbf16, #tpu.memory_space<vmem>>, %arg6: memref<1x96xf32, #tpu.memory_space<vmem>>, %arg7: memref<32x64xbf16, #tpu.memory_space<vmem>>, %arg8: memref<64x32xbf16, #tpu.memory_space<vmem>>, %arg9: memref<16x32xf32, #tpu.memory_space<vmem>>, %arg10: memref<16x32xf32, #tpu.memory_space<vmem>>) attributes {dimension_semantics = [#tpu.dimension_semantics<arbitrary>], iteration_bounds = array<i64: 1>, scalar_prefetch = 0 : i64, scratch_operands = 1 : i64, tpu.core_type = #tpu.core_type<tc>, window_params = [{transform_indices = @transform_0, window_bounds = array<i64: 16, 32>}, {pipeline_mode = #tpu.pipeline_mode<synchronous>, transform_indices = @transform_1, window_bounds = array<i64: 2, 32>}, {pipeline_mode = #tpu.pipeline_mode<synchronous>, transform_indices = @transform_2, window_bounds = array<i64: 32, 96>}, {pipeline_mode = #tpu.pipeline_mode<synchronous>, transform_indices = @transform_3, window_bounds = array<i64: 1, 96>}, {pipeline_mode = #tpu.pipeline_mode<synchronous>, transform_indices = @transform_4, window_bounds = array<i64: 32, 96>}, {pipeline_mode = #tpu.pipeline_mode<synchronous>, transform_indices = @transform_5, window_bounds = array<i64: 1, 96>}, {pipeline_mode = #tpu.pipeline_mode<synchronous>, transform_indices = @transform_6, window_bounds = array<i64: 32, 64>}, {pipeline_mode = #tpu.pipeline_mode<synchronous>, transform_indices = @transform_7, window_bounds = array<i64: 64, 32>}, {transform_indices = @transform_8, window_bounds = array<i64: 16, 32>}]} {
    %c0 = arith.constant 0 : index
    %c0_0 = arith.constant 0 : index
    %0 = vector.load %arg2[%c0, %c0_0] : memref<2x32xf32, #tpu.memory_space<vmem>>, vector<1x32xf32>
    %c1 = arith.constant 1 : index
    %c0_1 = arith.constant 0 : index
    %1 = vector.load %arg2[%c1, %c0_1] : memref<2x32xf32, #tpu.memory_space<vmem>>, vector<1x32xf32>
    %c0_2 = arith.constant 0 : index
    %c0_3 = arith.constant 0 : index
    %2 = vector.load %arg1[%c0_2, %c0_3] : memref<16x32xf32, #tpu.memory_space<vmem>>, vector<16x32xf32>
    %cst = arith.constant dense<0.000000e+00> : vector<16xf32>
    %3 = vector.multi_reduction <add>, %2, %cst [1] : vector<16x32xf32> to vector<16xf32>
    %4 = vector.shape_cast %3 : vector<16xf32> to vector<16x1xf32>
    %cst_4 = arith.constant 3.200000e+01 : f32
    %5 = vector.broadcast %cst_4 : f32 to vector<16x1xf32>
    %6 = arith.divf %4, %5 : vector<16x1xf32>
    %7 = vector.broadcast %6 : vector<16x1xf32> to vector<16x32xf32>
    %8 = arith.subf %2, %7 : vector<16x32xf32>
    %9 = arith.mulf %8, %8 : vector<16x32xf32>
    %cst_5 = arith.constant dense<0.000000e+00> : vector<16xf32>
    %10 = vector.multi_reduction <add>, %9, %cst_5 [1] : vector<16x32xf32> to vector<16xf32>
    %11 = vector.shape_cast %10 : vector<16xf32> to vector<16x1xf32>
    %cst_6 = arith.constant 3.200000e+01 : f32
    %12 = vector.broadcast %cst_6 : f32 to vector<16x1xf32>
    %13 = arith.divf %11, %12 : vector<16x1xf32>
    %14 = vector.broadcast %6 : vector<16x1xf32> to vector<16x32xf32>
    %15 = arith.subf %2, %14 : vector<16x32xf32>
    %cst_7 = arith.constant 9.99999974E-6 : f32
    %16 = vector.broadcast %cst_7 : f32 to vector<16x1xf32>
    %17 = arith.addf %13, %16 : vector<16x1xf32>
    %18 = math.rsqrt %17 : vector<16x1xf32>
    %19 = vector.broadcast %18 : vector<16x1xf32> to vector<16x32xf32>
    %20 = arith.mulf %15, %19 : vector<16x32xf32>
    %21 = vector.broadcast %0 : vector<1x32xf32> to vector<16x32xf32>
    %22 = arith.mulf %20, %21 : vector<16x32xf32>
    %23 = vector.broadcast %1 : vector<1x32xf32> to vector<16x32xf32>
    %24 = arith.addf %22, %23 : vector<16x32xf32>
    %25 = arith.truncf %24 : vector<16x32xf32> to vector<16x32xbf16>
    %c0_8 = arith.constant 0 : index
    %c0_9 = arith.constant 0 : index
    %26 = vector.load %arg3[%c0_8, %c0_9] : memref<32x96xbf16, #tpu.memory_space<vmem>>, vector<32x96xbf16>
    %cst_10 = arith.constant dense<0.000000e+00> : vector<16x96xf32>
    %27 = tpu.matmul %25, %26, %cst_10 {dimension_numbers = #tpu.dot_dimension_numbers<[1], [0], [0], [1], [0, 0, 1, 1], [], []>} : vector<16x32xbf16>, vector<32x96xbf16>, vector<16x96xf32> -> vector<16x96xf32>
    %c0_11 = arith.constant 0 : index
    %c0_12 = arith.constant 0 : index
    %28 = vector.load %arg4[%c0_11, %c0_12] : memref<1x96xf32, #tpu.memory_space<vmem>>, vector<1x96xf32>
    %29 = vector.broadcast %28 : vector<1x96xf32> to vector<16x96xf32>
    %30 = arith.addf %27, %29 : vector<16x96xf32>
    %31 = vector.extract_strided_slice %30 {offsets = [0, 0], sizes = [16, 32], strides = [1, 1]} : vector<16x96xf32> to vector<16x32xf32>
    %32 = arith.truncf %31 : vector<16x32xf32> to vector<16x32xbf16>
    %33 = vector.extract_strided_slice %30 {offsets = [0, 32], sizes = [16, 32], strides = [1, 1]} : vector<16x96xf32> to vector<16x32xf32>
    %34 = arith.truncf %33 : vector<16x32xf32> to vector<16x32xbf16>
    %35 = vector.extract_strided_slice %30 {offsets = [0, 64], sizes = [16, 32], strides = [1, 1]} : vector<16x96xf32> to vector<16x32xf32>
    %36 = arith.truncf %35 : vector<16x32xf32> to vector<16x32xbf16>
    %c0_13 = arith.constant 0 : index
    %c0_14 = arith.constant 0 : index
    %37 = vector.load %arg7[%c0_13, %c0_14] : memref<32x64xbf16, #tpu.memory_space<vmem>>, vector<32x64xbf16>
    %c0_15 = arith.constant 0 : index
    %c0_16 = arith.constant 0 : index
    %38 = vector.load %arg8[%c0_15, %c0_16] : memref<64x32xbf16, #tpu.memory_space<vmem>>, vector<64x32xbf16>
    %39 = vector.extract_strided_slice %32 {offsets = [0, 0], sizes = [8, 32], strides = [1, 1]} : vector<16x32xbf16> to vector<8x32xbf16>
    %40 = vector.extract_strided_slice %34 {offsets = [0, 0], sizes = [8, 32], strides = [1, 1]} : vector<16x32xbf16> to vector<8x32xbf16>
    %41 = vector.extract_strided_slice %36 {offsets = [0, 0], sizes = [8, 32], strides = [1, 1]} : vector<16x32xbf16> to vector<8x32xbf16>
    %42 = tpu.transpose %40, [1, 0] : vector<8x32xbf16> -> vector<32x8xbf16>
    %43 = tpu.concatenate %42, %42, %42, %42, %42, %42, %42, %42 in 1 : vector<32x8xbf16>, vector<32x8xbf16>, vector<32x8xbf16>, vector<32x8xbf16>, vector<32x8xbf16>, vector<32x8xbf16>, vector<32x8xbf16>, vector<32x8xbf16> -> vector<32x64xbf16>
    %44 = arith.mulf %43, %37 : vector<32x64xbf16>
    %cst_17 = arith.constant dense<0.000000e+00> : vector<8x64xf32>
    %45 = tpu.matmul %39, %44, %cst_17 {dimension_numbers = #tpu.dot_dimension_numbers<[1], [0], [0], [1], [0, 0, 1, 1], [], []>} : vector<8x32xbf16>, vector<32x64xbf16>, vector<8x64xf32> -> vector<8x64xf32>
    %cst_18 = arith.constant 5.000000e-01 : f32
    %46 = vector.broadcast %cst_18 : f32 to vector<8x64xf32>
    %47 = arith.mulf %45, %46 : vector<8x64xf32>
    %cst_19 = arith.constant dense<0xFF800000> : vector<8xf32>
    %48 = vector.multi_reduction <maximumf>, %47, %cst_19 [1] : vector<8x64xf32> to vector<8xf32>
    %49 = vector.shape_cast %48 : vector<8xf32> to vector<8x1xf32>
    %50 = vector.broadcast %49 : vector<8x1xf32> to vector<8x64xf32>
    %51 = arith.subf %47, %50 : vector<8x64xf32>
    %52 = math.exp %51 : vector<8x64xf32>
    %53 = tpu.concatenate %41, %41, %41, %41, %41, %41, %41, %41 in 0 : vector<8x32xbf16>, vector<8x32xbf16>, vector<8x32xbf16>, vector<8x32xbf16>, vector<8x32xbf16>, vector<8x32xbf16>, vector<8x32xbf16>, vector<8x32xbf16> -> vector<64x32xbf16>
    %54 = arith.mulf %53, %38 : vector<64x32xbf16>
    %55 = tpu.concatenate %54, %38 in 1 : vector<64x32xbf16>, vector<64x32xbf16> -> vector<64x64xbf16>
    %56 = arith.truncf %52 : vector<8x64xf32> to vector<8x64xbf16>
    %cst_20 = arith.constant dense<0.000000e+00> : vector<8x64xf32>
    %57 = tpu.matmul %56, %55, %cst_20 {dimension_numbers = #tpu.dot_dimension_numbers<[1], [0], [0], [1], [0, 0, 1, 1], [], []>} : vector<8x64xbf16>, vector<64x64xbf16>, vector<8x64xf32> -> vector<8x64xf32>
    %58 = vector.extract_strided_slice %57 {offsets = [0, 0], sizes = [8, 32], strides = [1, 1]} : vector<8x64xf32> to vector<8x32xf32>
    %59 = vector.extract_strided_slice %57 {offsets = [0, 32], sizes = [8, 32], strides = [1, 1]} : vector<8x64xf32> to vector<8x32xf32>
    %60 = arith.divf %58, %59 : vector<8x32xf32>
    %c0_21 = arith.constant 0 : index
    %c0_22 = arith.constant 0 : index
    %61 = vector.load %arg10[%c0_21, %c0_22] : memref<16x32xf32, #tpu.memory_space<vmem>>, vector<8x32xf32>
    tpu.vector_store %arg10[%c0_21, %c0_22], %60 {strides = array<i32>} : memref<16x32xf32, #tpu.memory_space<vmem>>, vector<8x32xf32>,
    %62 = vector.extract_strided_slice %32 {offsets = [8, 0], sizes = [8, 32], strides = [1, 1]} : vector<16x32xbf16> to vector<8x32xbf16>
    %63 = vector.extract_strided_slice %34 {offsets = [8, 0], sizes = [8, 32], strides = [1, 1]} : vector<16x32xbf16> to vector<8x32xbf16>
    %64 = vector.extract_strided_slice %36 {offsets = [8, 0], sizes = [8, 32], strides = [1, 1]} : vector<16x32xbf16> to vector<8x32xbf16>
    %65 = tpu.transpose %63, [1, 0] : vector<8x32xbf16> -> vector<32x8xbf16>
    %66 = tpu.concatenate %65, %65, %65, %65, %65, %65, %65, %65 in 1 : vector<32x8xbf16>, vector<32x8xbf16>, vector<32x8xbf16>, vector<32x8xbf16>, vector<32x8xbf16>, vector<32x8xbf16>, vector<32x8xbf16>, vector<32x8xbf16> -> vector<32x64xbf16>
    %67 = arith.mulf %66, %37 : vector<32x64xbf16>
    %cst_23 = arith.constant dense<0.000000e+00> : vector<8x64xf32>
    %68 = tpu.matmul %62, %67, %cst_23 {dimension_numbers = #tpu.dot_dimension_numbers<[1], [0], [0], [1], [0, 0, 1, 1], [], []>} : vector<8x32xbf16>, vector<32x64xbf16>, vector<8x64xf32> -> vector<8x64xf32>
    %cst_24 = arith.constant 5.000000e-01 : f32
    %69 = vector.broadcast %cst_24 : f32 to vector<8x64xf32>
    %70 = arith.mulf %68, %69 : vector<8x64xf32>
    %cst_25 = arith.constant dense<0xFF800000> : vector<8xf32>
    %71 = vector.multi_reduction <maximumf>, %70, %cst_25 [1] : vector<8x64xf32> to vector<8xf32>
    %72 = vector.shape_cast %71 : vector<8xf32> to vector<8x1xf32>
    %73 = vector.broadcast %72 : vector<8x1xf32> to vector<8x64xf32>
    %74 = arith.subf %70, %73 : vector<8x64xf32>
    %75 = math.exp %74 : vector<8x64xf32>
    %76 = tpu.concatenate %64, %64, %64, %64, %64, %64, %64, %64 in 0 : vector<8x32xbf16>, vector<8x32xbf16>, vector<8x32xbf16>, vector<8x32xbf16>, vector<8x32xbf16>, vector<8x32xbf16>, vector<8x32xbf16>, vector<8x32xbf16> -> vector<64x32xbf16>
    %77 = arith.mulf %76, %38 : vector<64x32xbf16>
    %78 = tpu.concatenate %77, %38 in 1 : vector<64x32xbf16>, vector<64x32xbf16> -> vector<64x64xbf16>
    %79 = arith.truncf %75 : vector<8x64xf32> to vector<8x64xbf16>
    %cst_26 = arith.constant dense<0.000000e+00> : vector<8x64xf32>
    %80 = tpu.matmul %79, %78, %cst_26 {dimension_numbers = #tpu.dot_dimension_numbers<[1], [0], [0], [1], [0, 0, 1, 1], [], []>} : vector<8x64xbf16>, vector<64x64xbf16>, vector<8x64xf32> -> vector<8x64xf32>
    %81 = vector.extract_strided_slice %80 {offsets = [0, 0], sizes = [8, 32], strides = [1, 1]} : vector<8x64xf32> to vector<8x32xf32>
    %82 = vector.extract_strided_slice %80 {offsets = [0, 32], sizes = [8, 32], strides = [1, 1]} : vector<8x64xf32> to vector<8x32xf32>
    %83 = arith.divf %81, %82 : vector<8x32xf32>
    %c8 = arith.constant 8 : index
    %c0_27 = arith.constant 0 : index
    %84 = vector.load %arg10[%c8, %c0_27] : memref<16x32xf32, #tpu.memory_space<vmem>>, vector<8x32xf32>
    tpu.vector_store %arg10[%c8, %c0_27], %83 {strides = array<i32>} : memref<16x32xf32, #tpu.memory_space<vmem>>, vector<8x32xf32>,
    %c0_28 = arith.constant 0 : index
    %c0_29 = arith.constant 0 : index
    %85 = vector.load %arg10[%c0_28, %c0_29] : memref<16x32xf32, #tpu.memory_space<vmem>>, vector<16x32xf32>
    %86 = arith.truncf %85 : vector<16x32xf32> to vector<16x32xbf16>
    %c0_30 = arith.constant 0 : index
    %c0_31 = arith.constant 0 : index
    %87 = vector.load %arg5[%c0_30, %c0_31] : memref<32x96xbf16, #tpu.memory_space<vmem>>, vector<32x32xbf16>
    %c0_32 = arith.constant 0 : index
    %c32 = arith.constant 32 : index
    %88 = vector.load %arg5[%c0_32, %c32] : memref<32x96xbf16, #tpu.memory_space<vmem>>, vector<32x32xbf16>
    %c0_33 = arith.constant 0 : index
    %c64 = arith.constant 64 : index
    %89 = vector.load %arg5[%c0_33, %c64] : memref<32x96xbf16, #tpu.memory_space<vmem>>, vector<32x32xbf16>
    %c0_34 = arith.constant 0 : index
    %c0_35 = arith.constant 0 : index
    %90 = vector.load %arg6[%c0_34, %c0_35] : memref<1x96xf32, #tpu.memory_space<vmem>>, vector<1x32xf32>
    %c0_36 = arith.constant 0 : index
    %c32_37 = arith.constant 32 : index
    %91 = vector.load %arg6[%c0_36, %c32_37] : memref<1x96xf32, #tpu.memory_space<vmem>>, vector<1x32xf32>
    %c0_38 = arith.constant 0 : index
    %c64_39 = arith.constant 64 : index
    %92 = vector.load %arg6[%c0_38, %c64_39] : memref<1x96xf32, #tpu.memory_space<vmem>>, vector<1x32xf32>
    %cst_40 = arith.constant dense<0.000000e+00> : vector<16x32xf32>
    %93 = tpu.matmul %86, %87, %cst_40 {dimension_numbers = #tpu.dot_dimension_numbers<[1], [0], [0], [1], [0, 0, 1, 1], [], []>} : vector<16x32xbf16>, vector<32x32xbf16>, vector<16x32xf32> -> vector<16x32xf32>
    %94 = vector.broadcast %90 : vector<1x32xf32> to vector<16x32xf32>
    %95 = arith.addf %93, %94 : vector<16x32xf32>
    %96 = arith.truncf %2 : vector<16x32xf32> to vector<16x32xbf16>
    %cst_41 = arith.constant dense<0.000000e+00> : vector<16x32xf32>
    %97 = tpu.matmul %96, %88, %cst_41 {dimension_numbers = #tpu.dot_dimension_numbers<[1], [0], [0], [1], [0, 0, 1, 1], [], []>} : vector<16x32xbf16>, vector<32x32xbf16>, vector<16x32xf32> -> vector<16x32xf32>
    %98 = vector.broadcast %91 : vector<1x32xf32> to vector<16x32xf32>
    %99 = arith.addf %97, %98 : vector<16x32xf32>
    %100 = arith.negf %99 : vector<16x32xf32>
    %101 = math.exp %100 : vector<16x32xf32>
    %cst_42 = arith.constant 1.000000e+00 : f32
    %102 = vector.broadcast %cst_42 : f32 to vector<16x32xf32>
    %103 = arith.addf %102, %101 : vector<16x32xf32>
    %104 = arith.divf %102, %103 : vector<16x32xf32>
    %105 = arith.mulf %104, %95 : vector<16x32xf32>
    %106 = arith.addf %105, %2 : vector<16x32xf32>
    %107 = arith.truncf %106 : vector<16x32xf32> to vector<16x32xbf16>
    %cst_43 = arith.constant dense<0.000000e+00> : vector<16x32xf32>
    %108 = tpu.matmul %107, %89, %cst_43 {dimension_numbers = #tpu.dot_dimension_numbers<[1], [0], [0], [1], [0, 0, 1, 1], [], []>} : vector<16x32xbf16>, vector<32x32xbf16>, vector<16x32xf32> -> vector<16x32xf32>
    %109 = vector.broadcast %92 : vector<1x32xf32> to vector<16x32xf32>
    %110 = arith.addf %108, %109 : vector<16x32xf32>
    %111 = arith.negf %110 : vector<16x32xf32>
    %112 = math.exp %111 : vector<16x32xf32>
    %cst_44 = arith.constant 1.000000e+00 : f32
    %113 = vector.broadcast %cst_44 : f32 to vector<16x32xf32>
    %114 = arith.addf %113, %112 : vector<16x32xf32>
    %115 = arith.divf %113, %114 : vector<16x32xf32>
    %cst_45 = arith.constant dense<0.000000e+00> : vector<16xf32>
    %116 = vector.multi_reduction <add>, %115, %cst_45 [1] : vector<16x32xf32> to vector<16xf32>
    %117 = vector.shape_cast %116 : vector<16xf32> to vector<16x1xf32>
    %cst_46 = arith.constant 3.200000e+01 : f32
    %118 = vector.broadcast %cst_46 : f32 to vector<16x1xf32>
    %119 = arith.divf %117, %118 : vector<16x1xf32>
    %120 = vector.broadcast %119 : vector<16x1xf32> to vector<16x32xf32>
    %121 = arith.subf %115, %120 : vector<16x32xf32>
    %122 = arith.mulf %121, %121 : vector<16x32xf32>
    %cst_47 = arith.constant dense<0.000000e+00> : vector<16xf32>
    %123 = vector.multi_reduction <add>, %122, %cst_47 [1] : vector<16x32xf32> to vector<16xf32>
    %124 = vector.shape_cast %123 : vector<16xf32> to vector<16x1xf32>
    %cst_48 = arith.constant 3.200000e+01 : f32
    %125 = vector.broadcast %cst_48 : f32 to vector<16x1xf32>
    %126 = arith.divf %124, %125 : vector<16x1xf32>
    %127 = vector.broadcast %119 : vector<16x1xf32> to vector<16x32xf32>
    %128 = arith.subf %115, %127 : vector<16x32xf32>
    %cst_49 = arith.constant 9.99999974E-6 : f32
    %129 = vector.broadcast %cst_49 : f32 to vector<16x1xf32>
    %130 = arith.addf %126, %129 : vector<16x1xf32>
    %131 = math.rsqrt %130 : vector<16x1xf32>
    %132 = vector.broadcast %131 : vector<16x1xf32> to vector<16x32xf32>
    %133 = arith.mulf %128, %132 : vector<16x32xf32>
    %134 = vector.broadcast %0 : vector<1x32xf32> to vector<16x32xf32>
    %135 = arith.mulf %133, %134 : vector<16x32xf32>
    %136 = vector.broadcast %1 : vector<1x32xf32> to vector<16x32xf32>
    %137 = arith.addf %135, %136 : vector<16x32xf32>
    %138 = arith.mulf %106, %137 : vector<16x32xf32>
    %139 = arith.addf %138, %106 : vector<16x32xf32>
    %c0_50 = arith.constant 0 : index
    %c0_51 = arith.constant 0 : index
    %140 = vector.load %arg9[%c0_50, %c0_51] : memref<16x32xf32, #tpu.memory_space<vmem>>, vector<16x32xf32>
    tpu.vector_store %arg9[%c0_50, %c0_51], %139 {strides = array<i32>} : memref<16x32xf32, #tpu.memory_space<vmem>>, vector<16x32xf32>,
    return
  }
  func.func @transform_0(%arg0: i32) -> (i32, i32) {
    %c0_i32 = arith.constant 0 : i32
    %c0_i32_0 = arith.constant 0 : i32
    return %arg0, %c0_i32 : i32, i32
  }
  func.func @transform_1(%arg0: i32) -> (i32, i32) {
    %c0_i32 = arith.constant 0 : i32
    %c0_i32_0 = arith.constant 0 : i32
    %c0_i32_1 = arith.constant 0 : i32
    return %c0_i32, %c0_i32_0 : i32, i32
  }
  func.func @transform_2(%arg0: i32) -> (i32, i32) {
    %c0_i32 = arith.constant 0 : i32
    %c0_i32_0 = arith.constant 0 : i32
    %c0_i32_1 = arith.constant 0 : i32
    return %c0_i32, %c0_i32_0 : i32, i32
  }
  func.func @transform_3(%arg0: i32) -> (i32, i32) {
    %c0_i32 = arith.constant 0 : i32
    %c0_i32_0 = arith.constant 0 : i32
    %c0_i32_1 = arith.constant 0 : i32
    return %c0_i32, %c0_i32_0 : i32, i32
  }
  func.func @transform_4(%arg0: i32) -> (i32, i32) {
    %c0_i32 = arith.constant 0 : i32
    %c0_i32_0 = arith.constant 0 : i32
    %c0_i32_1 = arith.constant 0 : i32
    return %c0_i32, %c0_i32_0 : i32, i32
  }
  func.func @transform_5(%arg0: i32) -> (i32, i32) {
    %c0_i32 = arith.constant 0 : i32
    %c0_i32_0 = arith.constant 0 : i32
    %c0_i32_1 = arith.constant 0 : i32
    return %c0_i32, %c0_i32_0 : i32, i32
  }
  func.func @transform_6(%arg0: i32) -> (i32, i32) {
    %c0_i32 = arith.constant 0 : i32
    %c0_i32_0 = arith.constant 0 : i32
    %c0_i32_1 = arith.constant 0 : i32
    return %c0_i32, %c0_i32_0 : i32, i32
  }
  func.func @transform_7(%arg0: i32) -> (i32, i32) {
    %c0_i32 = arith.constant 0 : i32
    %c0_i32_0 = arith.constant 0 : i32
    %c0_i32_1 = arith.constant 0 : i32
    return %c0_i32, %c0_i32_0 : i32, i32
  }
  func.func @transform_8(%arg0: i32) -> (i32, i32) {
    %c0_i32 = arith.constant 0 : i32
    %c0_i32_0 = arith.constant 0 : i32
    return %arg0, %c0_i32 : i32, i32
  }
}

</mosaic_0001>

<bundles_post_ra>
// kernel: tpu_custom_call.1
= control target key start
LH: loop header
LB: loop body
LE: loop exit
PB: predicated region body
PF: predicated region fallthrough
CT: control target
= control target key end

     0   :  { %13 = vsyncpa [#allocation4], 0  ;;  %s1499_s0 = inlined_call_operand.vmem [shape: f32[16,32], index: 0, kind: input, shape index: {}]   ;;  %s1500_s1 = inlined_call_operand.vmem [shape: f32[2,32], index: 1, kind: input, shape index: {}]   ;;  %s1501_s2 = inlined_call_operand.vmem [shape: bf16[32,96], index: 2, kind: input, shape index: {}]   ;;  %s1502_s3 = inlined_call_operand.vmem [shape: f32[1,96], index: 3, kind: input, shape index: {}]   ;;  %s1503_s4 = inlined_call_operand.vmem [shape: bf16[32,96], index: 4, kind: input, shape index: {}]   ;;  %s1504_s5 = inlined_call_operand.vmem [shape: f32[1,96], index: 5, kind: input, shape index: {}]   ;;  %s1505_s6 = inlined_call_operand.hbm [shape: bf16[32,64], index: 6, kind: input, shape index: {}]   ;;  %s1506_s7 = inlined_call_operand.vmem [shape: bf16[64,32], index: 7, kind: input, shape index: {}]   ;;  %s1507_s8 = inlined_call_operand.hbm [shape: f32[16,32], index: 8, kind: output, shape index: {}]  }
   0x1   :  { %14 = vsyncpa [#allocation5], 0  ;;  %s1155_s27 = smov [#allocation3]   ;;  %s1107_s9 = scalar_lea.hbm %s1505_s6, 256 }
   0x2   :  { %s32_s28 = sshll.u32 %s1155_s27, 4  ;;  %p1108_p0 = scmp.ne.s32.totalorder %s1505_s6, %s1107_s9  ;;  %s33_s28 = int_to_ptr.vmem [resolvable:$true] %s32_s28 }
   0x3   :  { %p1111_p1 = scmp.lt.u32.totalorder %s1107_s9, %s1505_s6 }
   0x5   :  { %p1113_p2 = pnand %p1111_p1, %p1108_p0 }
   0x7   :  { %1116 = shalt.err (!%p1113_p2)
}
   0x8   :  { %s1117_s14 = scalar_lea.vmem %s33_s28, 256  ;;  %p1122_p4 = scmp.lt.s32.totalorder %s33_s28, %s33_s28 }
   0x9   :  { %p1118_p3 = scmp.ne.s32.totalorder %s33_s28, %s1117_s14  ;;  %p1123_p5 = scmp.lt.s32.totalorder %s1117_s14, %s1117_s14 }
   0xb   :  { %p1124_p6 = por %p1123_p5, %p1122_p4 }
   0xd   :  { %p1125_p7 = pnand %p1124_p6, %p1118_p3 }
   0xf   :  { %1128 = shalt.err (!%p1125_p7)
}
  0x10   :  { %s1156_s15 = smov 64   ;;  %s1157_s16 = smov 4  }
  0x11   :  { %38 = dma.hbm_to_vmem [thread:$0]  %s1505_s6, 256, %s33_s28, [#allocation4], %s1156_s15, %s1156_s15, %s1157_s16  }
  0x12   :  { %1151 = dma.done.wait [#allocation4], 256  }
  0x13   :  { %1152 = vsyncadd [#allocation4], 4294967040  ;;  %vm49_vm0 = vcmask 261120   ;;  %v1232_v0 = vld [vmem:[%s1499_s0] sm:$0xff]  ;;  %v1237_v1 = vld [vmem:[%s1499_s0 + $0x8] sm:$0xff]  ;;  %v1158_v15 = vmov 0.0  }
  0x14   :  { %v50_v2 = vsel %vm49_vm0, %v1232_v0, 0.0  ;;  %v53_v3 = vsel %vm49_vm0, %v1237_v1, 0.0  ;;  %v1065_v14 = vld [vmem:[%s1501_s2] sm:$0xff]   ;;  %977 = vmatprep.subr.bf16.mxu0 %v1158_v15  ;;  %985 = vmatprep.subr.bf16.mxu1 %v1158_v15  ;;  %v1066_v16 = vld [vmem:[%s1501_s2 + $0x8] sm:$0xff]   ;;  %vm1159_vm1 = vmmov 0   ;;  %s1162_s30 = smov 8  }
  0x15   :  { %51 = vadd.xlane.f32.xlu0 %v50_v2  ;;  %978 = vmatpush3.bf16.msra.mxu0 %v1065_v14  ;;  %v1264_v25 = vld [vmem:[%s1500_s1] ss:$0 sm:$0xff]  ;;  %v1270_v29 = vld [vmem:[%s1500_s1 + $0x1] ss:$0 sm:$0xff]  ;;  %s1160_s1 = smov 96   ;;  %s1163_s9 = smov 24  }
  0x16   :  { %981 = vmatprep.mubr.msk.bf16.mxu0 %vm1159_vm1, %v1158_v15  ;;  %979 = vmatprep.subr.bf16.mxu0 %v1158_v15  ;;  %v925_v34 = vld [vmem:[%s1502_s3] ss:$0 sm:$0xff]  ;;  %s1161_s3 = smov 16   ;;  %s1164_s10 = smov 32   ;;  %v1331_v50 = vld [vmem:[%s1506_s7 + $0x10] sm:$0xff]   ;;  %v1339_v51 = vld [vmem:[%s1506_s7 + $0x8] sm:$0xff]  }
  0x17   :  { %989 = vmatprep.mubr.msk.bf16.mxu1 %vm1159_vm1, %v1158_v15  ;;  %s1165_s11 = smov 40   ;;  %s1166_s12 = smov 48   ;;  %v1067_v49 = vld [vmem:[%s1506_s7] sm:$0xff]   ;;  %v1346_v52 = vld [vmem:[%s1506_s7 + $0x18] sm:$0xff]   ;;  %vm220_vm2 = vcmask 64512   ;;  %vm227_vm3 = vcmask 130048  }
  0x18   :  { %s1167_s13 = smov 56   ;;  %vm232_vm4 = vcmask 195584   ;;  %vm241_vm5 = vcmask 326656   ;;  %vm246_vm6 = vcmask 392192   ;;  %vm251_vm7 = vcmask 457728  }
  0x19   :  { %54 = vadd.xlane.f32.xlu0 %v53_v3  ;;  %980 = vmatpush3.bf16.msra.mxu0 %v1066_v16  ;;  %vm324_vm8 = vcmask 1043456   ;;  %vm316_vm9 = vcmask 523264  }
  0x1a   :  { %993 = vmatprep.subr.bf16.mxu0 %v1158_v15 }
  0xa2   :  { %v52_v4 = vpop.xlane.xlu0 %51 }
  0xa3   :  { %v57_v5 = vmul.f32 0.03125, %v52_v4 }
  0xa5   :  { %v59_v6 = vsub.f32 %v1232_v0, %v57_v5  ;;  %v1071_v5 = vld [vmem:[#allocation3] sm:$0xff]  }
  0xa6   :  { %v55_v7 = vpop.xlane.xlu0 %54 }
  0xa7   :  { %v58_v8 = vmul.f32 0.03125, %v55_v7  ;;  %v61_v9 = vmul.f32 %v59_v6, %v59_v6 }
  0xa9   :  { %v60_v10 = vsub.f32 %v1237_v1, %v58_v8  ;;  %v63_v11 = vsel %vm49_vm0, %v61_v9, 0.0 }
  0xaa   :  { %64 = vadd.xlane.f32.xlu1 %v63_v11 }
  0xab   :  { %v62_v12 = vmul.f32 %v60_v10, %v60_v10 }
  0xad   :  { %v66_v13 = vsel %vm49_vm0, %v62_v12, 0.0 }
  0xae   :  { %67 = vadd.xlane.f32.xlu1 %v66_v13 }
 0x137   :  { %v65_v17 = vpop.xlane.xlu1 %64 }
 0x138   :  { %v69_v18 = vmul.f32 0.03125, %v65_v17 }
 0x13a   :  { %v71_v19 = vadd.f32 1e-05, %v69_v18 }
 0x13b   :  { %v68_v20 = vpop.xlane.xlu1 %67 }
 0x13c   :  { %1075 = vrsqrt.f32 %v71_v19  ;;  %v70_v21 = vmul.f32 0.03125, %v68_v20 }
 0x13e   :  { %v72_v22 = vadd.f32 1e-05, %v70_v21 }
 0x140   :  { %1077 = vrsqrt.f32 %v72_v22 }
 0x146   :  { %v1076_v23 = vpop.eup %1075 }
 0x147   :  { %v75_v24 = vmul.f32 %v1076_v23, %v59_v6 }
 0x149   :  { %v81_v28 = vmul.f32 %v1264_v25, %v75_v24 }
 0x14a   :  { %v1078_v26 = vpop.eup %1077 }
 0x14b   :  { %v76_v27 = vmul.f32 %v1078_v26, %v60_v10  ;;  %v87_v31 = vadd.f32 %v1270_v29, %v81_v28 }
 0x14d   :  { %v82_v30 = vmul.f32 %v1264_v25, %v76_v27 }
 0x14f   :  { %v88_v32 = vadd.f32 %v1270_v29, %v82_v30 }
 0x151   :  { %v89_v33 = vpack.c.bf16 %v88_v32, %v87_v31 }
 0x153   :  { %982 = vmatmul.mubr.msk.bf16.vlgmr.msra.gmra.mrb[0].mxu0 %vm49_vm0, %v89_v33  ;;  %v1072_v33 = vld [vmem:[#allocation3 + $0x8] sm:$0xff]  }
 0x154   :  { %1001 = vmatprep.mubr.msk.bf16.mxu0 %vm1159_vm1, %v1158_v15 }
 0x226   :  { %v150_v35 = vpop.f32.mrb[0].mxu0 }
 0x227   :  { %v983_v36 = vpop.f32.mrb[1].mxu0  ;;  %v151_v38 = vadd.f32 %v925_v34, %v150_v35 }
 0x228   :  { %v153_v37 = vpop.f32.mrb[2].mxu0 }
 0x229   :  { %v154_v39 = vadd.f32 %v925_v34, %v153_v37  ;;  %v984_v40 = vpop.f32.mrb[3].mxu0 }
 0x22b   :  { %v1281_v41 = vpack.c.bf16 %v154_v39, %v151_v38 }
 0x22d   :  { %171 = vrot.lane.b32.xlu0 %v1281_v41, %s1160_s1  ;;  %v1286_v42 = vrot.slane %v1281_v41, 4 }
 0x22f   :  { %451 = vrot.lane.b32.xlu1 %v1286_v42, %s1160_s1 }
 0x29f   :  { %v172_v43 = vpop.permute.xlu0 %171 }
 0x2a0   :  { %174 = vxpose.xlu1.c.b16.start.end [1/1] (short) (narrow) %v172_v43, 32 }
 0x2a1   :  { %v452_v44 = vpop.permute.xlu1 %451 }
 0x2a2   :  { %454 = vxpose.xlu0.c.b16.start.end [1/1] (short) (narrow) %v452_v44, 32 }
 0x306   :  { %v182_v45 = vpop.trf.xlu1 }
 0x307   :  { %196 = vrot.lane.b32.xlu1 %v182_v45, %s1161_s3  ;;  %192 = vrot.lane.b32.xlu0 %v182_v45, %s1162_s30 }
 0x308   :  { %v1291_v46 = vpop.trf.xlu0 }
 0x30a   :  { %v1298_v47 = vpop.trf.xlu1 }
 0x30b   :  { %200 = vrot.lane.b32.xlu1 %v182_v45, %s1163_s9  ;;  %472 = vrot.lane.b32.xlu0 %v1291_v46, %s1162_s30 }
 0x30c   :  { %v1309_v48 = vpop.trf.xlu0 }
 0x30f   :  { %204 = vrot.lane.b32.xlu1 %v182_v45, %s1164_s10  ;;  %476 = vrot.lane.b32.xlu0 %v1291_v46, %s1161_s3 }
 0x313   :  { %208 = vrot.lane.b32.xlu1 %v182_v45, %s1165_s11  ;;  %480 = vrot.lane.b32.xlu0 %v1291_v46, %s1163_s9 }
 0x317   :  { %212 = vrot.lane.b32.xlu1 %v182_v45, %s1166_s12  ;;  %194 = vrot.lane.b32.xlu0 %v1298_v47, %s1162_s30 }
 0x31b   :  { %216 = vrot.lane.b32.xlu1 %v182_v45, %s1167_s13  ;;  %198 = vrot.lane.b32.xlu0 %v1298_v47, %s1161_s3 }
 0x31f   :  { %484 = vrot.lane.b32.xlu1 %v1291_v46, %s1164_s10  ;;  %202 = vrot.lane.b32.xlu0 %v1298_v47, %s1163_s9 }
 0x323   :  { %488 = vrot.lane.b32.xlu1 %v1291_v46, %s1165_s11  ;;  %206 = vrot.lane.b32.xlu0 %v1298_v47, %s1164_s10 }
 0x327   :  { %492 = vrot.lane.b32.xlu1 %v1291_v46, %s1166_s12  ;;  %474 = vrot.lane.b32.xlu0 %v1309_v48, %s1162_s30 }
 0x32b   :  { %496 = vrot.lane.b32.xlu1 %v1291_v46, %s1167_s13  ;;  %478 = vrot.lane.b32.xlu0 %v1309_v48, %s1161_s3 }
 0x32f   :  { %210 = vrot.lane.b32.xlu1 %v1298_v47, %s1165_s11  ;;  %482 = vrot.lane.b32.xlu0 %v1309_v48, %s1163_s9 }
 0x333   :  { %214 = vrot.lane.b32.xlu1 %v1298_v47, %s1166_s12  ;;  %486 = vrot.lane.b32.xlu0 %v1309_v48, %s1164_s10 }
 0x337   :  { %218 = vrot.lane.b32.xlu1 %v1298_v47, %s1167_s13  ;;  %494 = vrot.lane.b32.xlu0 %v1309_v48, %s1166_s12 }
 0x33b   :  { %490 = vrot.lane.b32.xlu1 %v1309_v48, %s1165_s11  ;;  %348 = vrot.lane.b32.xlu0 %v1067_v49, %s1156_s15 }
 0x33f   :  { %498 = vrot.lane.b32.xlu1 %v1309_v48, %s1167_s13  ;;  %352 = vrot.lane.b32.xlu0 %v1331_v50, %s1156_s15 }
 0x343   :  { %350 = vrot.lane.b32.xlu1 %v1339_v51, %s1156_s15 }
 0x347   :  { %354 = vrot.lane.b32.xlu1 %v1346_v52, %s1156_s15 }
 0x34b   :  { %376 = vrot.lane.b32.xlu1 %v1067_v49, %s1164_s10 }
 0x379   :  { %v193_v53 = vpop.permute.xlu0 %192  ;;  %v197_v54 = vpop.permute.xlu1 %196 }
 0x37a   :  { %v223_v61 = vsel %vm220_vm2, %v182_v45, %v193_v53 }
 0x37b   :  { %v229_v62 = vsel %vm227_vm3, %v223_v61, %v197_v54 }
 0x37d   :  { %v473_v55 = vpop.permute.xlu0 %472  ;;  %v201_v56 = vpop.permute.xlu1 %200 }
 0x37e   :  { %v234_v3 = vsel %vm232_vm4, %v229_v62, %v201_v56  ;;  %v502_v28 = vsel %vm220_vm2, %v1291_v46, %v473_v55  ;;  %v1392_v62 = vsel %vm324_vm8, %v1286_v42, %v1281_v41 }
 0x381   :  { %v477_v57 = vpop.permute.xlu0 %476  ;;  %v205_v58 = vpop.permute.xlu1 %204 }
 0x382   :  { %v238_v4 = vsel %vm49_vm0, %v234_v3, %v205_v58  ;;  %v507_v31 = vsel %vm227_vm3, %v502_v28, %v477_v57 }
 0x385   :  { %v481_v59 = vpop.permute.xlu0 %480  ;;  %v209_v60 = vpop.permute.xlu1 %208 }
 0x386   :  { %v243_v6 = vsel %vm241_vm5, %v238_v4, %v209_v60  ;;  %v511_v34 = vsel %vm232_vm4, %v507_v31, %v481_v59 }
 0x389   :  { %v195_v63 = vpop.permute.xlu0 %194  ;;  %v213_v2 = vpop.permute.xlu1 %212 }
 0x38a   :  { %v248_v7 = vsel %vm246_vm6, %v243_v6, %v213_v2  ;;  %v226_v23 = vsel %vm220_vm2, %v1298_v47, %v195_v63 }
 0x38d   :  { %v199_v8 = vpop.permute.xlu0 %198  ;;  %v217_v9 = vpop.permute.xlu1 %216 }
 0x38e   :  { %v253_v10 = vsel %vm251_vm7, %v248_v7, %v217_v9  ;;  %v231_v24 = vsel %vm227_vm3, %v226_v23, %v199_v8 }
 0x38f   :  { %v270_v11 = vmul.bf16 %v1071_v5, %v253_v10 }
 0x391   :  { %v203_v12 = vpop.permute.xlu0 %202  ;;  %986 = vmatpush3.bf16.msra.mxu1 %v270_v11  ;;  %v485_v13 = vpop.permute.xlu1 %484 }
 0x392   :  { %987 = vmatprep.subr.bf16.mxu1 %v1158_v15  ;;  %v236_v30 = vsel %vm232_vm4, %v231_v24, %v203_v12  ;;  %v515_v36 = vsel %vm49_vm0, %v511_v34, %v485_v13 }
 0x395   :  { %v207_v14 = vpop.permute.xlu0 %206  ;;  %v489_v16 = vpop.permute.xlu1 %488 }
 0x396   :  { %v240_v32 = vsel %vm49_vm0, %v236_v30, %v207_v14  ;;  %v519_v40 = vsel %vm241_vm5, %v515_v36, %v489_v16 }
 0x399   :  { %v475_v17 = vpop.permute.xlu0 %474  ;;  %v493_v18 = vpop.permute.xlu1 %492 }
 0x39a   :  { %v505_v43 = vsel %vm220_vm2, %v1309_v48, %v475_v17  ;;  %v523_v45 = vsel %vm246_vm6, %v519_v40, %v493_v18  ;;  %v326_v48 = vsel %vm324_vm8, %v1281_v41, %v1286_v42 }
 0x39d   :  { %v479_v19 = vpop.permute.xlu0 %478  ;;  %v497_v20 = vpop.permute.xlu1 %496 }
 0x39e   :  { %v509_v46 = vsel %vm227_vm3, %v505_v43, %v479_v19  ;;  %v527_v49 = vsel %vm251_vm7, %v523_v45, %v497_v20 }
 0x39f   :  { %v532_v59 = vmul.bf16 %v1071_v5, %v527_v49 }
 0x3a1   :  { %v483_v21 = vpop.permute.xlu0 %482  ;;  %v211_v22 = vpop.permute.xlu1 %210 }
 0x3a2   :  { %v245_v35 = vsel %vm241_vm5, %v240_v32, %v211_v22  ;;  %v513_v53 = vsel %vm232_vm4, %v509_v46, %v483_v21 }
 0x3a5   :  { %v487_v26 = vpop.permute.xlu0 %486  ;;  %v215_v27 = vpop.permute.xlu1 %214 }
 0x3a6   :  { %v250_v37 = vsel %vm246_vm6, %v245_v35, %v215_v27  ;;  %v517_v54 = vsel %vm49_vm0, %v513_v53, %v487_v26 }
 0x3a9   :  { %v495_v38 = vpop.permute.xlu0 %494  ;;  %v219_v39 = vpop.permute.xlu1 %218 }
 0x3aa   :  { %v256_v44 = vsel %vm251_vm7, %v250_v37, %v219_v39 }
 0x3ab   :  { %v271_v47 = vmul.bf16 %v1072_v33, %v256_v44 }
 0x3ad   :  { %v349_v55 = vpop.permute.xlu0 %348  ;;  %988 = vmatpush3.bf16.msra.mxu1 %v271_v47  ;;  %v491_v56 = vpop.permute.xlu1 %490 }
 0x3ae   :  { %v521_v57 = vsel %vm241_vm5, %v517_v54, %v491_v56  ;;  %1005 = vmatprep.subr.bf16.mxu1 %v1158_v15  ;;  %v360_v58 = vmul.bf16 %v349_v55, %v326_v48  ;;  %v585_v2 = vmul.bf16 %v1392_v62, %v349_v55 }
 0x3af   :  { %v525_v60 = vsel %vm246_vm6, %v521_v57, %v495_v38 }
 0x3b0   :  { %990 = vmatmul.mubr.msk.bf16.vlgmr.msra.gmra.mrb[0].mxu1 %vm49_vm0, %v1281_v41  ;;  %368 = vrot.lane.b32.xlu0 %v360_v58, %s1156_s15  ;;  %v1073_v58 = vld [vmem:[%s1503_s4] sm:$0xff]  }
 0x3b1   :  { %1006 = vmatpush3.bf16.msra.mxu1 %v532_v59  ;;  %v499_v61 = vpop.permute.xlu1 %498  ;;  %1009 = vmatprep.mubr.msk.bf16.mxu1 %vm1159_vm1, %v1158_v15  ;;  %v353_v6 = vpop.permute.xlu0 %352  ;;  %v1074_v59 = vld [vmem:[%s1503_s4 + $0x8] sm:$0xff]  }
 0x3b2   :  { %v530_v63 = vsel %vm251_vm7, %v525_v60, %v499_v61  ;;  %1007 = vmatprep.subr.bf16.mxu1 %v1158_v15  ;;  %v362_v9 = vmul.bf16 %v353_v6, %v326_v48 }
 0x3b3   :  { %v533_v3 = vmul.bf16 %v1072_v33, %v530_v63 }
 0x3b4   :  { %593 = vrot.lane.b32.xlu0 %v585_v2, %s1156_s15 }
 0x3b5   :  { %1008 = vmatpush3.bf16.msra.mxu1 %v533_v3  ;;  %v351_v4 = vpop.permute.xlu1 %350 }
 0x3b6   :  { %v361_v5 = vmul.bf16 %v351_v4, %v326_v48  ;;  %1013 = vmatprep.subr.bf16.mxu1 %v1158_v15  ;;  %v586_v7 = vmul.bf16 %v1392_v62, %v351_v4 }
 0x3b8   :  { %1010 = vmatmul.mubr.msk.bf16.vlgmr.msra.gmra.mrb[4].mxu1 %vm49_vm0, %v1286_v42  ;;  %370 = vrot.lane.b32.xlu1 %v361_v5, %s1156_s15  ;;  %v587_v42 = vmul.bf16 %v1392_v62, %v353_v6  ;;  %v939_v6 = vld [vmem:[%s1504_s5] ss:$0 sm:$0xff]  ;;  %s1168_s5 = smov [#allocation6]  }
 0x3b9   :  { %378 = vrot.lane.b32.xlu0 %v1339_v51, %s1164_s10  ;;  %v355_v41 = vpop.permute.xlu1 %354  ;;  %1021 = vmatprep.mubr.msk.bf16.mxu1 %vm1159_vm1, %v1158_v15 }
 0x3ba   :  { %v588_v8 = vmul.bf16 %v1392_v62, %v355_v41  ;;  %v363_v51 = vmul.bf16 %v355_v41, %v326_v48 }
 0x3bc   :  { %595 = vrot.lane.b32.xlu1 %v586_v7, %s1156_s15 }
 0x3bd   :  { %372 = vrot.lane.b32.xlu0 %v362_v9, %s1156_s15  ;;  %v377_v10 = vpop.permute.xlu1 %376 }
 0x3c0   :  { %380 = vrot.lane.b32.xlu1 %v1331_v50, %s1164_s10 }
 0x3c1   :  { %597 = vrot.lane.b32.xlu0 %v587_v42, %s1156_s15 }
 0x3c4   :  { %374 = vrot.lane.b32.xlu1 %v363_v51, %s1156_s15 }
 0x422   :  { %v369_v11 = vpop.permute.xlu0 %368 }
 0x423   :  { %v386_v12 = vsel %vm49_vm0, %v369_v11, %v377_v10 }
 0x424   :  { %994 = vmatpush3.bf16.msra.mxu0 %v386_v12 }
 0x425   :  { %995 = vmatprep.subr.bf16.mxu0 %v1158_v15 }
 0x426   :  { %v594_v13 = vpop.permute.xlu0 %593 }
 0x427   :  { %v602_v14 = vsel %vm49_vm0, %v594_v13, %v377_v10 }
 0x428   :  { %1014 = vmatpush3.bf16.msra.mxu1 %v602_v14 }
 0x429   :  { %1015 = vmatprep.subr.bf16.mxu1 %v1158_v15 }
 0x42a   :  { %v371_v16 = vpop.permute.xlu1 %370 }
 0x42b   :  { %v379_v50 = vpop.permute.xlu0 %378 }
 0x42c   :  { %v390_v17 = vsel %vm49_vm0, %v371_v16, %v379_v50  ;;  %v734_v16 = vpack.c.bf16 %v1237_v1, %v1232_v0 }
 0x42d   :  { %996 = vmatpush3.bf16.msra.mxu0 %v390_v17 }
 0x42e   :  { %v596_v18 = vpop.permute.xlu1 %595  ;;  %997 = vmatprep.subr.bf16.mxu0 %v1158_v15 }
 0x42f   :  { %v605_v19 = vsel %vm49_vm0, %v596_v18, %v379_v50  ;;  %v373_v20 = vpop.permute.xlu0 %372 }
 0x430   :  { %1016 = vmatpush3.bf16.msra.mxu1 %v605_v19 }
 0x431   :  { %1017 = vmatprep.subr.bf16.mxu1 %v1158_v15 }
 0x432   :  { %v381_v21 = vpop.permute.xlu1 %380 }
 0x433   :  { %v394_v22 = vsel %vm49_vm0, %v373_v20, %v381_v21  ;;  %v598_v23 = vpop.permute.xlu0 %597 }
 0x434   :  { %v608_v24 = vsel %vm49_vm0, %v598_v23, %v381_v21  ;;  %998 = vmatpush3.bf16.msra.mxu0 %v394_v22 }
 0x435   :  { %1018 = vmatpush3.bf16.msra.mxu1 %v608_v24  ;;  %999 = vmatprep.subr.bf16.mxu0 %v1158_v15 }
 0x436   :  { %1019 = vmatprep.subr.bf16.mxu1 %v1158_v15  ;;  %v375_v44 = vpop.permute.xlu1 %374 }
 0x483   :  { %v309_v26 = vpop.f32.mrb[0].mxu1 }
 0x484   :  { %v315_v27 = vmul.f32 0.5, %v309_v26  ;;  %v991_v28 = vpop.f32.mrb[1].mxu1 }
 0x485   :  { %v312_v30 = vpop.f32.mrb[2].mxu1 }
 0x486   :  { %v992_v31 = vpop.f32.mrb[3].mxu1  ;;  %v317_v32 = vsel %vm316_vm9, %v315_v27, -inf }
 0x487   :  { %318 = vmax.xlane.f32.xlu0 %v317_v32 }
 0x48b   :  { %v570_v33 = vpop.f32.mrb[4].mxu1 }
 0x48c   :  { %v576_v34 = vmul.f32 0.5, %v570_v33  ;;  %v1011_v35 = vpop.f32.mrb[5].mxu1 }
 0x48d   :  { %v573_v36 = vpop.f32.mrb[6].mxu1 }
 0x48e   :  { %v1012_v37 = vpop.f32.mrb[7].mxu1  ;;  %v577_v38 = vsel %vm316_vm9, %v576_v34, -inf }
 0x48f   :  { %578 = vmax.xlane.f32.xlu1 %v577_v38 }
 0x49d   :  { %382 = vrot.lane.b32.xlu0 %v1346_v52, %s1164_s10 }
 0x4a0   :  { %599 = vrot.lane.b32.xlu1 %v588_v8, %s1156_s15 }
 0x514   :  { %v319_v39 = vpop.xlane.xlu0 %318 }
 0x515   :  { %v320_v40 = vsub.f32 %v315_v27, %v319_v39 }
 0x517   :  { %v321_v43 = vmul.f32 1.442695, %v320_v40 }
 0x518   :  { %v383_v45 = vpop.permute.xlu0 %382 }
 0x519   :  { %1079 = vpow2.f32 %v321_v43  ;;  %v398_v46 = vsel %vm49_vm0, %v375_v44, %v383_v45 }
 0x51a   :  { %1000 = vmatpush3.bf16.msra.mxu0 %v398_v46 }
 0x51b   :  { %1025 = vmatprep.subr.bf16.mxu0 %v1158_v15 }
 0x51c   :  { %v579_v47 = vpop.xlane.xlu1 %578 }
 0x51d   :  { %v580_v49 = vsub.f32 %v576_v34, %v579_v47 }
 0x51f   :  { %v581_v53 = vmul.f32 1.442695, %v580_v49 }
 0x520   :  { %v600_v54 = vpop.permute.xlu1 %599 }
 0x521   :  { %1081 = vpow2.f32 %v581_v53  ;;  %v611_v52 = vsel %vm49_vm0, %v600_v54, %v383_v45 }
 0x522   :  { %1020 = vmatpush3.bf16.msra.mxu1 %v611_v52 }
 0x523   :  { %v1080_v55 = vpop.eup %1079  ;;  %1041 = vmatprep.subr.bf16.mxu1 %v1158_v15 }
 0x524   :  { %v400_v56 = vpack.c.bf16 %v1080_v55, %v1080_v55 }
 0x526   :  { %1002 = vmatmul.mubr.msk.bf16.vlgmr.msra.gmra.mrb[4].mxu0 %vm316_vm9, %v400_v56 }
 0x527   :  { %1029 = vmatprep.mubr.msk.bf16.mxu0 %vm1159_vm1, %v1158_v15  ;;  %1026 = vmatpush3.bf16.msra.mxu0 %v1073_v58 }
 0x528   :  { %1027 = vmatprep.subr.bf16.mxu0 %v1158_v15 }
 0x52b   :  { %v1082_v48 = vpop.eup %1081  ;;  %1028 = vmatpush3.bf16.msra.mxu0 %v1074_v59 }
 0x52c   :  { %v613_v57 = vpack.c.bf16 %v1082_v48, %v1082_v48  ;;  %1033 = vmatprep.subr.bf16.mxu0 %v1158_v15 }
 0x52e   :  { %1022 = vmatmul.mubr.msk.bf16.vlgmr.msra.gmra.mrb[8].mxu1 %vm316_vm9, %v613_v57 }
 0x52f   :  { %1045 = vmatprep.mubr.msk.bf16.mxu1 %vm1159_vm1, %v1158_v15 }
 0x5f9   :  { %v438_v60 = vpop.f32.mrb[4].mxu0 }
 0x5fa   :  { %445 = vrot.lane.b32.xlu0 %v438_v60, %s1160_s1  ;;  %v1003_v61 = vpop.f32.mrb[5].mxu0 }
 0x5fb   :  { %v441_v62 = vpop.f32.mrb[6].mxu0 }
 0x5fc   :  { %v1004_v63 = vpop.f32.mrb[7].mxu0 }
 0x5fe   :  { %735 = vrot.lane.b32.xlu0 %v1073_v58, %s1160_s1 }
 0x601   :  { %v651_v2 = vpop.f32.mrb[8].mxu1 }
 0x602   :  { %658 = vrot.lane.b32.xlu1 %v651_v2, %s1160_s1  ;;  %v1023_v3 = vpop.f32.mrb[9].mxu1  ;;  %741 = vrot.lane.b32.xlu0 %v939_v6, %s1160_s1 }
 0x603   :  { %v654_v4 = vpop.f32.mrb[10].mxu1 }
 0x604   :  { %v1024_v5 = vpop.f32.mrb[11].mxu1 }
 0x606   :  { %737 = vrot.lane.b32.xlu1 %v1074_v59, %s1160_s1  ;;  %807 = vrot.lane.b32.xlu0 %v1074_v59, %s1156_s15 }
 0x60a   :  { %805 = vrot.lane.b32.xlu1 %v1073_v58, %s1156_s15 }
 0x60e   :  { %811 = vrot.lane.b32.xlu1 %v939_v6, %s1156_s15  ;;  %s911_s15 = sshll.u32 %s1168_s5, 4  ;;  %s912_s15 = int_to_ptr.vmem [resolvable:$true] %s911_s15 }
 0x60f   :  { %s1129_s2 = scalar_lea.vmem %s912_s15, 256  ;;  %p1134_p9 = scmp.lt.s32.totalorder %s912_s15, %s912_s15 }
 0x610   :  { %p1130_p8 = scmp.ne.s32.totalorder %s912_s15, %s1129_s2  ;;  %p1135_p10 = scmp.lt.s32.totalorder %s1129_s2, %s1129_s2 }
 0x612   :  { %p1136_p11 = por %p1135_p10, %p1134_p9 }
 0x614   :  { %p1137_p12 = pnand %p1136_p11, %p1130_p8 }
 0x66c   :  { %v446_v41 = vpop.permute.xlu0 %445 }
 0x66d   :  { %1083 = vrcp.f32 %v446_v41 }
 0x670   :  { %v736_v13 = vpop.permute.xlu0 %735 }
 0x674   :  { %v659_v7 = vpop.permute.xlu1 %658  ;;  %v742_v50 = vpop.permute.xlu0 %741 }
 0x675   :  { %1085 = vrcp.f32 %v659_v7 }
 0x677   :  { %v1084_v8 = vpop.eup %1083 }
 0x678   :  { %v449_v9 = vmul.f32 %v1084_v8, %v438_v60  ;;  %v738_v14 = vpop.permute.xlu1 %737  ;;  %v808_v18 = vpop.permute.xlu0 %807 }
 0x67a   :  { %450 = vst.msk [vmem:[#allocation2] sm:$0xff] %vm49_vm0, %v449_v9 }
 0x67c   :  { %v806_v17 = vpop.permute.xlu1 %805 }
 0x67d   :  { %1042 = vmatpush3.bf16.msra.mxu1 %v806_v17 }
 0x67e   :  { %1043 = vmatprep.subr.bf16.mxu1 %v1158_v15 }
 0x67f   :  { %v1086_v42 = vpop.eup %1085 }
 0x680   :  { %v662_v51 = vmul.f32 %v1086_v42, %v651_v2  ;;  %v812_v47 = vpop.permute.xlu1 %811 }
 0x681   :  { %v664_v10 = vld [vmem:[#allocation2] sm:$0xff]  ;;  %1044 = vmatpush3.bf16.msra.mxu1 %v808_v18 }
 0x682   :  { %663 = vst.msk [vmem:[#allocation2 + $0x8] sm:$0xff] %vm49_vm0, %v662_v51 }
 0x689   :  { %v665_v11 = vld [vmem:[#allocation2 + $0x8] sm:$0xff] }
 0x68a   :  { %v666_v12 = vpack.c.bf16 %v665_v11, %v664_v10 }
 0x68c   :  { %1030 = vmatmul.mubr.msk.bf16.vlgmr.msra.gmra.mrb[8].mxu0 %vm49_vm0, %v666_v12 }
 0x68d   :  { %1034 = vmatpush3.bf16.msra.mxu0 %v736_v13  ;;  %1037 = vmatprep.mubr.msk.bf16.mxu0 %vm1159_vm1, %v1158_v15 }
 0x68e   :  { %1035 = vmatprep.subr.bf16.mxu0 %v1158_v15 }
 0x691   :  { %1036 = vmatpush3.bf16.msra.mxu0 %v738_v14 }
 0x694   :  { %1038 = vmatmul.mubr.msk.bf16.vlgmr.msra.gmra.mrb[12].mxu0 %vm49_vm0, %v734_v16 }
 0x75f   :  { %v727_v19 = vpop.f32.mrb[8].mxu0 }
 0x760   :  { %v1031_v20 = vpop.f32.mrb[9].mxu0  ;;  %v728_v36 = vadd.f32 %v939_v6, %v727_v19 }
 0x761   :  { %v730_v21 = vpop.f32.mrb[10].mxu0 }
 0x762   :  { %v1032_v22 = vpop.f32.mrb[11].mxu0  ;;  %v731_v38 = vadd.f32 %v939_v6, %v730_v21 }
 0x767   :  { %v781_v23 = vpop.f32.mrb[12].mxu0 }
 0x768   :  { %v782_v24 = vadd.f32 %v781_v23, %v742_v50  ;;  %v1039_v26 = vpop.f32.mrb[13].mxu0 }
 0x769   :  { %v784_v27 = vpop.f32.mrb[14].mxu0 }
 0x76a   :  { %v944_v28 = vmul.f32 -1.442695, %v782_v24  ;;  %v785_v30 = vadd.f32 %v784_v27, %v742_v50  ;;  %v1040_v31 = vpop.f32.mrb[15].mxu0 }
 0x76c   :  { %1087 = vpow2.f32 %v944_v28  ;;  %v945_v32 = vmul.f32 -1.442695, %v785_v30 }
 0x76e   :  { %1089 = vpow2.f32 %v945_v32 }
 0x776   :  { %v1088_v33 = vpop.eup %1087 }
 0x777   :  { %v794_v34 = vadd.f32 1.0, %v1088_v33 }
 0x778   :  { %v1090_v35 = vpop.eup %1089 }
 0x779   :  { %1091 = vrcp.f32 %v794_v34  ;;  %v795_v15 = vadd.f32 1.0, %v1090_v35 }
 0x77b   :  { %1093 = vrcp.f32 %v795_v15 }
 0x783   :  { %v1092_v37 = vpop.eup %1091 }
 0x784   :  { %v800_v39 = vmul.f32 %v1092_v37, %v728_v36 }
 0x785   :  { %v1094_v40 = vpop.eup %1093 }
 0x786   :  { %v801_v43 = vmul.f32 %v1094_v40, %v731_v38  ;;  %v802_v44 = vadd.f32 %v800_v39, %v1232_v0 }
 0x788   :  { %v803_v45 = vadd.f32 %v801_v43, %v1237_v1 }
 0x78a   :  { %v804_v46 = vpack.c.bf16 %v803_v45, %v802_v44 }
 0x78c   :  { %1046 = vmatmul.mubr.msk.bf16.vlgmr.msra.gmra.mrb[12].mxu1 %vm49_vm0, %v804_v46 }
 0x85f   :  { %v851_v49 = vpop.f32.mrb[12].mxu1 }
 0x860   :  { %v852_v53 = vadd.f32 %v851_v49, %v812_v47  ;;  %v1047_v54 = vpop.f32.mrb[13].mxu1 }
 0x861   :  { %v854_v52 = vpop.f32.mrb[14].mxu1 }
 0x862   :  { %v947_v55 = vmul.f32 -1.442695, %v852_v53  ;;  %v855_v56 = vadd.f32 %v854_v52, %v812_v47  ;;  %v1048_v48 = vpop.f32.mrb[15].mxu1 }
 0x864   :  { %1095 = vpow2.f32 %v947_v55  ;;  %v948_v57 = vmul.f32 -1.442695, %v855_v56 }
 0x866   :  { %1097 = vpow2.f32 %v948_v57 }
 0x86e   :  { %v1096_v58 = vpop.eup %1095 }
 0x86f   :  { %v864_v59 = vadd.f32 1.0, %v1096_v58 }
 0x870   :  { %v1098_v60 = vpop.eup %1097 }
 0x871   :  { %1099 = vrcp.f32 %v864_v59  ;;  %v865_v0 = vadd.f32 1.0, %v1098_v60 }
 0x873   :  { %1101 = vrcp.f32 %v865_v0 }
 0x87b   :  { %v1100_v1 = vpop.eup %1099 }
 0x87c   :  { %v870_v61 = vsel %vm49_vm0, %v1100_v1, 0.0 }
 0x87d   :  { %v1102_v62 = vpop.eup %1101  ;;  %871 = vadd.xlane.f32.xlu0 %v870_v61 }
 0x87e   :  { %v873_v63 = vsel %vm49_vm0, %v1102_v62, 0.0 }
 0x87f   :  { %874 = vadd.xlane.f32.xlu1 %v873_v63 }
 0x90a   :  { %v872_v2 = vpop.xlane.xlu0 %871 }
 0x90b   :  { %v876_v3 = vmul.f32 0.03125, %v872_v2 }
 0x90c   :  { %v875_v4 = vpop.xlane.xlu1 %874 }
 0x90d   :  { %v878_v5 = vsub.f32 %v1100_v1, %v876_v3  ;;  %v877_v6 = vmul.f32 0.03125, %v875_v4 }
 0x90f   :  { %v879_v41 = vsub.f32 %v1102_v62, %v877_v6  ;;  %v880_v7 = vmul.f32 %v878_v5, %v878_v5 }
 0x911   :  { %v882_v8 = vsel %vm49_vm0, %v880_v7, 0.0  ;;  %v881_v9 = vmul.f32 %v879_v41, %v879_v41 }
 0x912   :  { %883 = vadd.xlane.f32.xlu0 %v882_v8 }
 0x913   :  { %v885_v42 = vsel %vm49_vm0, %v881_v9, 0.0 }
 0x916   :  { %886 = vadd.xlane.f32.xlu0 %v885_v42 }
 0x99f   :  { %v884_v51 = vpop.xlane.xlu0 %883 }
 0x9a0   :  { %v888_v10 = vmul.f32 0.03125, %v884_v51 }
 0x9a2   :  { %v890_v11 = vadd.f32 1e-05, %v888_v10 }
 0x9a3   :  { %v887_v12 = vpop.xlane.xlu0 %886 }
 0x9a4   :  { %1103 = vrsqrt.f32 %v890_v11  ;;  %v889_v13 = vmul.f32 0.03125, %v887_v12 }
 0x9a6   :  { %v891_v14 = vadd.f32 1e-05, %v889_v13 }
 0x9a8   :  { %1105 = vrsqrt.f32 %v891_v14 }
 0x9ae   :  { %v1104_v16 = vpop.eup %1103 }
 0x9af   :  { %v894_v50 = vmul.f32 %v1104_v16, %v878_v5 }
 0x9b1   :  { %v896_v17 = vmul.f32 %v1264_v25, %v894_v50 }
 0x9b2   :  { %v1106_v18 = vpop.eup %1105 }
 0x9b3   :  { %v898_v19 = vadd.f32 %v1270_v29, %v896_v17  ;;  %v895_v20 = vmul.f32 %v1106_v18, %v879_v41 }
 0x9b5   :  { %v897_v21 = vmul.f32 %v1264_v25, %v895_v20  ;;  %v900_v22 = vmul.f32 %v898_v19, %v802_v44 }
 0x9b7   :  { %v899_v23 = vadd.f32 %v1270_v29, %v897_v21  ;;  %v902_v24 = vadd.f32 %v900_v22, %v802_v44 }
 0x9b9   :  { %v901_v26 = vmul.f32 %v899_v23, %v803_v45  ;;  %904 = vst.msk [vmem:[#allocation6] sm:$0xff] %vm49_vm0, %v902_v24 }
 0x9bb   :  { %v903_v27 = vadd.f32 %v901_v26, %v803_v45 }
 0x9bd   :  { %905 = vst.msk [vmem:[#allocation6 + $0x8] sm:$0xff] %vm49_vm0, %v903_v27 }
 0x9be   :  { %1140 = shalt.err (!%p1137_p12)
}
 0x9bf   :  { %s1141_s27 = scalar_lea.hbm %s1507_s8, 256 }
 0x9c0   :  { %p1142_p13 = scmp.ne.s32.totalorder %s1507_s8, %s1141_s27  ;;  %p1145_p0 = scmp.lt.u32.totalorder %s1141_s27, %s1507_s8 }
 0x9c2   :  { %p1147_p1 = pnand %p1145_p0, %p1142_p13 }
 0x9c4   :  { %1150 = shalt.err (!%p1147_p1)
}
 0x9c5   :  { %s1169_s9 = smov 128  }
 0x9c6   :  { %917 = dma.vmem_to_hbm [thread:$0]  %s912_s15, 256, %s1507_s8, [#allocation5], %s1169_s9, %s1169_s9, %s1162_s30  }
 0x9c7   :  { %1153 = dma.done.wait [#allocation5], 256  }
 0x9c8   :  { %1154 = vsyncadd [#allocation5], 4294967040 }
 0x9c9   :  { %921 = vsyncpa [#allocation4], 1 }
 0x9ca   :  { %922 = vsyncpa [#allocation5], 1 }

// kernel: tpu_custom_call.1
= control target key start
LH: loop header
LB: loop body
LE: loop exit
PB: predicated region body
PF: predicated region fallthrough
CT: control target
= control target key end

     0   :  { %13 = vsyncpa [#allocation4], 0  ;;  %s1499_s0 = inlined_call_operand.vmem [shape: f32[16,32], index: 0, kind: input, shape index: {}]   ;;  %s1500_s1 = inlined_call_operand.vmem [shape: f32[2,32], index: 1, kind: input, shape index: {}]   ;;  %s1501_s2 = inlined_call_operand.vmem [shape: bf16[32,96], index: 2, kind: input, shape index: {}]   ;;  %s1502_s3 = inlined_call_operand.vmem [shape: f32[1,96], index: 3, kind: input, shape index: {}]   ;;  %s1503_s4 = inlined_call_operand.vmem [shape: bf16[32,96], index: 4, kind: input, shape index: {}]   ;;  %s1504_s5 = inlined_call_operand.vmem [shape: f32[1,96], index: 5, kind: input, shape index: {}]   ;;  %s1505_s6 = inlined_call_operand.hbm [shape: bf16[32,64], index: 6, kind: input, shape index: {}]   ;;  %s1506_s7 = inlined_call_operand.vmem [shape: bf16[64,32], index: 7, kind: input, shape index: {}]   ;;  %s1507_s8 = inlined_call_operand.hbm [shape: f32[16,32], index: 8, kind: output, shape index: {}]  }
   0x1   :  { %14 = vsyncpa [#allocation5], 0  ;;  %s1155_s27 = smov [#allocation3]   ;;  %s1107_s9 = scalar_lea.hbm %s1505_s6, 256 }
   0x2   :  { %s32_s28 = sshll.u32 %s1155_s27, 4  ;;  %p1108_p0 = scmp.ne.s32.totalorder %s1505_s6, %s1107_s9  ;;  %s33_s28 = int_to_ptr.vmem [resolvable:$true] %s32_s28 }
   0x3   :  { %p1111_p1 = scmp.lt.u32.totalorder %s1107_s9, %s1505_s6 }
   0x5   :  { %p1113_p2 = pnand %p1111_p1, %p1108_p0 }
   0x7   :  { %1116 = shalt.err (!%p1113_p2)
}
   0x8   :  { %s1117_s14 = scalar_lea.vmem %s33_s28, 256  ;;  %p1122_p4 = scmp.lt.s32.totalorder %s33_s28, %s33_s28 }
   0x9   :  { %p1118_p3 = scmp.ne.s32.totalorder %s33_s28, %s1117_s14  ;;  %p1123_p5 = scmp.lt.s32.totalorder %s1117_s14, %s1117_s14 }
   0xb   :  { %p1124_p6 = por %p1123_p5, %p1122_p4 }
   0xd   :  { %p1125_p7 = pnand %p1124_p6, %p1118_p3 }
   0xf   :  { %1128 = shalt.err (!%p1125_p7)
}
  0x10   :  { %s1156_s15 = smov 64   ;;  %s1157_s16 = smov 4  }
  0x11   :  { %38 = dma.hbm_to_vmem [thread:$0]  %s1505_s6, 256, %s33_s28, [#allocation4], %s1156_s15, %s1156_s15, %s1157_s16  }
  0x12   :  { %1151 = dma.done.wait [#allocation4], 256  }
  0x13   :  { %1152 = vsyncadd [#allocation4], 4294967040  ;;  %vm49_vm0 = vcmask 261120   ;;  %v1232_v0 = vld [vmem:[%s1499_s0] sm:$0xff]  ;;  %v1237_v1 = vld [vmem:[%s1499_s0 + $0x8] sm:$0xff]  ;;  %v1158_v15 = vmov 0.0  }
  0x14   :  { %v50_v2 = vsel %vm49_vm0, %v1232_v0, 0.0  ;;  %v53_v3 = vsel %vm49_vm0, %v1237_v1, 0.0  ;;  %v1065_v14 = vld [vmem:[%s1501_s2] sm:$0xff]   ;;  %977 = vmatprep.subr.bf16.mxu0 %v1158_v15  ;;  %985 = vmatprep.subr.bf16.mxu1 %v1158_v15  ;;  %v1066_v16 = vld [vmem:[%s1501_s2 + $0x8] sm:$0xff]   ;;  %vm1159_vm1 = vmmov 0   ;;  %s1162_s30 = smov 8  }
  0x15   :  { %51 = vadd.xlane.f32.xlu0 %v50_v2  ;;  %978 = vmatpush3.bf16.msra.mxu0 %v1065_v14  ;;  %v1264_v25 = vld [vmem:[%s1500_s1] ss:$0 sm:$0xff]  ;;  %v1270_v29 = vld [vmem:[%s1500_s1 + $0x1] ss:$0 sm:$0xff]  ;;  %s1160_s1 = smov 96   ;;  %s1163_s9 = smov 24  }
  0x16   :  { %981 = vmatprep.mubr.msk.bf16.mxu0 %vm1159_vm1, %v1158_v15  ;;  %979 = vmatprep.subr.bf16.mxu0 %v1158_v15  ;;  %v925_v34 = vld [vmem:[%s1502_s3] ss:$0 sm:$0xff]  ;;  %s1161_s3 = smov 16   ;;  %s1164_s10 = smov 32   ;;  %v1331_v50 = vld [vmem:[%s1506_s7 + $0x10] sm:$0xff]   ;;  %v1339_v51 = vld [vmem:[%s1506_s7 + $0x8] sm:$0xff]  }
  0x17   :  { %989 = vmatprep.mubr.msk.bf16.mxu1 %vm1159_vm1, %v1158_v15  ;;  %s1165_s11 = smov 40   ;;  %s1166_s12 = smov 48   ;;  %v1067_v49 = vld [vmem:[%s1506_s7] sm:$0xff]   ;;  %v1346_v52 = vld [vmem:[%s1506_s7 + $0x18] sm:$0xff]   ;;  %vm220_vm2 = vcmask 64512   ;;  %vm227_vm3 = vcmask 130048  }
  0x18   :  { %s1167_s13 = smov 56   ;;  %vm232_vm4 = vcmask 195584   ;;  %vm241_vm5 = vcmask 326656   ;;  %vm246_vm6 = vcmask 392192   ;;  %vm251_vm7 = vcmask 457728  }
  0x19   :  { %54 = vadd.xlane.f32.xlu0 %v53_v3  ;;  %980 = vmatpush3.bf16.msra.mxu0 %v1066_v16  ;;  %vm324_vm8 = vcmask 1043456   ;;  %vm316_vm9 = vcmask 523264  }
  0x1a   :  { %993 = vmatprep.subr.bf16.mxu0 %v1158_v15 }
  0xa2   :  { %v52_v4 = vpop.xlane.xlu0 %51 }
  0xa3   :  { %v57_v5 = vmul.f32 0.03125, %v52_v4 }
  0xa5   :  { %v59_v6 = vsub.f32 %v1232_v0, %v57_v5  ;;  %v1071_v5 = vld [vmem:[#allocation3] sm:$0xff]  }
  0xa6   :  { %v55_v7 = vpop.xlane.xlu0 %54 }
  0xa7   :  { %v58_v8 = vmul.f32 0.03125, %v55_v7  ;;  %v61_v9 = vmul.f32 %v59_v6, %v59_v6 }
  0xa9   :  { %v60_v10 = vsub.f32 %v1237_v1, %v58_v8  ;;  %v63_v11 = vsel %vm49_vm0, %v61_v9, 0.0 }
  0xaa   :  { %64 = vadd.xlane.f32.xlu1 %v63_v11 }
  0xab   :  { %v62_v12 = vmul.f32 %v60_v10, %v60_v10 }
  0xad   :  { %v66_v13 = vsel %vm49_vm0, %v62_v12, 0.0 }
  0xae   :  { %67 = vadd.xlane.f32.xlu1 %v66_v13 }
 0x137   :  { %v65_v17 = vpop.xlane.xlu1 %64 }
 0x138   :  { %v69_v18 = vmul.f32 0.03125, %v65_v17 }
 0x13a   :  { %v71_v19 = vadd.f32 1e-05, %v69_v18 }
 0x13b   :  { %v68_v20 = vpop.xlane.xlu1 %67 }
 0x13c   :  { %1075 = vrsqrt.f32 %v71_v19  ;;  %v70_v21 = vmul.f32 0.03125, %v68_v20 }
 0x13e   :  { %v72_v22 = vadd.f32 1e-05, %v70_v21 }
 0x140   :  { %1077 = vrsqrt.f32 %v72_v22 }
 0x146   :  { %v1076_v23 = vpop.eup %1075 }
 0x147   :  { %v75_v24 = vmul.f32 %v1076_v23, %v59_v6 }
 0x149   :  { %v81_v28 = vmul.f32 %v1264_v25, %v75_v24 }
 0x14a   :  { %v1078_v26 = vpop.eup %1077 }
 0x14b   :  { %v76_v27 = vmul.f32 %v1078_v26, %v60_v10  ;;  %v87_v31 = vadd.f32 %v1270_v29, %v81_v28 }
 0x14d   :  { %v82_v30 = vmul.f32 %v1264_v25, %v76_v27 }
 0x14f   :  { %v88_v32 = vadd.f32 %v1270_v29, %v82_v30 }
 0x151   :  { %v89_v33 = vpack.c.bf16 %v88_v32, %v87_v31 }
 0x153   :  { %982 = vmatmul.mubr.msk.bf16.vlgmr.msra.gmra.mrb[0].mxu0 %vm49_vm0, %v89_v33  ;;  %v1072_v33 = vld [vmem:[#allocation3 + $0x8] sm:$0xff]  }
 0x154   :  { %1001 = vmatprep.mubr.msk.bf16.mxu0 %vm1159_vm1, %v1158_v15 }
 0x226   :  { %v150_v35 = vpop.f32.mrb[0].mxu0 }
 0x227   :  { %v983_v36 = vpop.f32.mrb[1].mxu0  ;;  %v151_v38 = vadd.f32 %v925_v34, %v150_v35 }
 0x228   :  { %v153_v37 = vpop.f32.mrb[2].mxu0 }
 0x229   :  { %v154_v39 = vadd.f32 %v925_v34, %v153_v37  ;;  %v984_v40 = vpop.f32.mrb[3].mxu0 }
 0x22b   :  { %v1281_v41 = vpack.c.bf16 %v154_v39, %v151_v38 }
 0x22d   :  { %171 = vrot.lane.b32.xlu0 %v1281_v41, %s1160_s1  ;;  %v1286_v42 = vrot.slane %v1281_v41, 4 }
 0x22f   :  { %451 = vrot.lane.b32.xlu1 %v1286_v42, %s1160_s1 }
 0x29f   :  { %v172_v43 = vpop.permute.xlu0 %171 }
 0x2a0   :  { %174 = vxpose.xlu1.c.b16.start.end [1/1] (short) (narrow) %v172_v43, 32 }
 0x2a1   :  { %v452_v44 = vpop.permute.xlu1 %451 }
 0x2a2   :  { %454 = vxpose.xlu0.c.b16.start.end [1/1] (short) (narrow) %v452_v44, 32 }
 0x306   :  { %v182_v45 = vpop.trf.xlu1 }
 0x307   :  { %196 = vrot.lane.b32.xlu1 %v182_v45, %s1161_s3  ;;  %192 = vrot.lane.b32.xlu0 %v182_v45, %s1162_s30 }
 0x308   :  { %v1291_v46 = vpop.trf.xlu0 }
 0x30a   :  { %v1298_v47 = vpop.trf.xlu1 }
 0x30b   :  { %200 = vrot.lane.b32.xlu1 %v182_v45, %s1163_s9  ;;  %472 = vrot.lane.b32.xlu0 %v1291_v46, %s1162_s30 }
 0x30c   :  { %v1309_v48 = vpop.trf.xlu0 }
 0x30f   :  { %204 = vrot.lane.b32.xlu1 %v182_v45, %s1164_s10  ;;  %476 = vrot.lane.b32.xlu0 %v1291_v46, %s1161_s3 }
 0x313   :  { %208 = vrot.lane.b32.xlu1 %v182_v45, %s1165_s11  ;;  %480 = vrot.lane.b32.xlu0 %v1291_v46, %s1163_s9 }
 0x317   :  { %212 = vrot.lane.b32.xlu1 %v182_v45, %s1166_s12  ;;  %194 = vrot.lane.b32.xlu0 %v1298_v47, %s1162_s30 }
 0x31b   :  { %216 = vrot.lane.b32.xlu1 %v182_v45, %s1167_s13  ;;  %198 = vrot.lane.b32.xlu0 %v1298_v47, %s1161_s3 }
 0x31f   :  { %484 = vrot.lane.b32.xlu1 %v1291_v46, %s1164_s10  ;;  %202 = vrot.lane.b32.xlu0 %v1298_v47, %s1163_s9 }
 0x323   :  { %488 = vrot.lane.b32.xlu1 %v1291_v46, %s1165_s11  ;;  %206 = vrot.lane.b32.xlu0 %v1298_v47, %s1164_s10 }
 0x327   :  { %492 = vrot.lane.b32.xlu1 %v1291_v46, %s1166_s12  ;;  %474 = vrot.lane.b32.xlu0 %v1309_v48, %s1162_s30 }
 0x32b   :  { %496 = vrot.lane.b32.xlu1 %v1291_v46, %s1167_s13  ;;  %478 = vrot.lane.b32.xlu0 %v1309_v48, %s1161_s3 }
 0x32f   :  { %210 = vrot.lane.b32.xlu1 %v1298_v47, %s1165_s11  ;;  %482 = vrot.lane.b32.xlu0 %v1309_v48, %s1163_s9 }
 0x333   :  { %214 = vrot.lane.b32.xlu1 %v1298_v47, %s1166_s12  ;;  %486 = vrot.lane.b32.xlu0 %v1309_v48, %s1164_s10 }
 0x337   :  { %218 = vrot.lane.b32.xlu1 %v1298_v47, %s1167_s13  ;;  %494 = vrot.lane.b32.xlu0 %v1309_v48, %s1166_s12 }
 0x33b   :  { %490 = vrot.lane.b32.xlu1 %v1309_v48, %s1165_s11  ;;  %348 = vrot.lane.b32.xlu0 %v1067_v49, %s1156_s15 }
 0x33f   :  { %498 = vrot.lane.b32.xlu1 %v1309_v48, %s1167_s13  ;;  %352 = vrot.lane.b32.xlu0 %v1331_v50, %s1156_s15 }
 0x343   :  { %350 = vrot.lane.b32.xlu1 %v1339_v51, %s1156_s15 }
 0x347   :  { %354 = vrot.lane.b32.xlu1 %v1346_v52, %s1156_s15 }
 0x34b   :  { %376 = vrot.lane.b32.xlu1 %v1067_v49, %s1164_s10 }
 0x379   :  { %v193_v53 = vpop.permute.xlu0 %192  ;;  %v197_v54 = vpop.permute.xlu1 %196 }
 0x37a   :  { %v223_v61 = vsel %vm220_vm2, %v182_v45, %v193_v53 }
 0x37b   :  { %v229_v62 = vsel %vm227_vm3, %v223_v61, %v197_v54 }
 0x37d   :  { %v473_v55 = vpop.permute.xlu0 %472  ;;  %v201_v56 = vpop.permute.xlu1 %200 }
 0x37e   :  { %v234_v3 = vsel %vm232_vm4, %v229_v62, %v201_v56  ;;  %v502_v28 = vsel %vm220_vm2, %v1291_v46, %v473_v55  ;;  %v1392_v62 = vsel %vm324_vm8, %v1286_v42, %v1281_v41 }
 0x381   :  { %v477_v57 = vpop.permute.xlu0 %476  ;;  %v205_v58 = vpop.permute.xlu1 %204 }
 0x382   :  { %v238_v4 = vsel %vm49_vm0, %v234_v3, %v205_v58  ;;  %v507_v31 = vsel %vm227_vm3, %v502_v28, %v477_v57 }
 0x385   :  { %v481_v59 = vpop.permute.xlu0 %480  ;;  %v209_v60 = vpop.permute.xlu1 %208 }
 0x386   :  { %v243_v6 = vsel %vm241_vm5, %v238_v4, %v209_v60  ;;  %v511_v34 = vsel %vm232_vm4, %v507_v31, %v481_v59 }
 0x389   :  { %v195_v63 = vpop.permute.xlu0 %194  ;;  %v213_v2 = vpop.permute.xlu1 %212 }
 0x38a   :  { %v248_v7 = vsel %vm246_vm6, %v243_v6, %v213_v2  ;;  %v226_v23 = vsel %vm220_vm2, %v1298_v47, %v195_v63 }
 0x38d   :  { %v199_v8 = vpop.permute.xlu0 %198  ;;  %v217_v9 = vpop.permute.xlu1 %216 }
 0x38e   :  { %v253_v10 = vsel %vm251_vm7, %v248_v7, %v217_v9  ;;  %v231_v24 = vsel %vm227_vm3, %v226_v23, %v199_v8 }
 0x38f   :  { %v270_v11 = vmul.bf16 %v1071_v5, %v253_v10 }
 0x391   :  { %v203_v12 = vpop.permute.xlu0 %202  ;;  %986 = vmatpush3.bf16.msra.mxu1 %v270_v11  ;;  %v485_v13 = vpop.permute.xlu1 %484 }
 0x392   :  { %987 = vmatprep.subr.bf16.mxu1 %v1158_v15  ;;  %v236_v30 = vsel %vm232_vm4, %v231_v24, %v203_v12  ;;  %v515_v36 = vsel %vm49_vm0, %v511_v34, %v485_v13 }
 0x395   :  { %v207_v14 = vpop.permute.xlu0 %206  ;;  %v489_v16 = vpop.permute.xlu1 %488 }
 0x396   :  { %v240_v32 = vsel %vm49_vm0, %v236_v30, %v207_v14  ;;  %v519_v40 = vsel %vm241_vm5, %v515_v36, %v489_v16 }
 0x399   :  { %v475_v17 = vpop.permute.xlu0 %474  ;;  %v493_v18 = vpop.permute.xlu1 %492 }
 0x39a   :  { %v505_v43 = vsel %vm220_vm2, %v1309_v48, %v475_v17  ;;  %v523_v45 = vsel %vm246_vm6, %v519_v40, %v493_v18  ;;  %v326_v48 = vsel %vm324_vm8, %v1281_v41, %v1286_v42 }
 0x39d   :  { %v479_v19 = vpop.permute.xlu0 %478  ;;  %v497_v20 = vpop.permute.xlu1 %496 }
 0x39e   :  { %v509_v46 = vsel %vm227_vm3, %v505_v43, %v479_v19  ;;  %v527_v49 = vsel %vm251_vm7, %v523_v45, %v497_v20 }
 0x39f   :  { %v532_v59 = vmul.bf16 %v1071_v5, %v527_v49 }
 0x3a1   :  { %v483_v21 = vpop.permute.xlu0 %482  ;;  %v211_v22 = vpop.permute.xlu1 %210 }
 0x3a2   :  { %v245_v35 = vsel %vm241_vm5, %v240_v32, %v211_v22  ;;  %v513_v53 = vsel %vm232_vm4, %v509_v46, %v483_v21 }
 0x3a5   :  { %v487_v26 = vpop.permute.xlu0 %486  ;;  %v215_v27 = vpop.permute.xlu1 %214 }
 0x3a6   :  { %v250_v37 = vsel %vm246_vm6, %v245_v35, %v215_v27  ;;  %v517_v54 = vsel %vm49_vm0, %v513_v53, %v487_v26 }
 0x3a9   :  { %v495_v38 = vpop.permute.xlu0 %494  ;;  %v219_v39 = vpop.permute.xlu1 %218 }
 0x3aa   :  { %v256_v44 = vsel %vm251_vm7, %v250_v37, %v219_v39 }
 0x3ab   :  { %v271_v47 = vmul.bf16 %v1072_v33, %v256_v44 }
 0x3ad   :  { %v349_v55 = vpop.permute.xlu0 %348  ;;  %988 = vmatpush3.bf16.msra.mxu1 %v271_v47  ;;  %v491_v56 = vpop.permute.xlu1 %490 }
 0x3ae   :  { %v521_v57 = vsel %vm241_vm5, %v517_v54, %v491_v56  ;;  %1005 = vmatprep.subr.bf16.mxu1 %v1158_v15  ;;  %v360_v58 = vmul.bf16 %v349_v55, %v326_v48  ;;  %v585_v2 = vmul.bf16 %v1392_v62, %v349_v55 }
 0x3af   :  { %v525_v60 = vsel %vm246_vm6, %v521_v57, %v495_v38 }
 0x3b0   :  { %990 = vmatmul.mubr.msk.bf16.vlgmr.msra.gmra.mrb[0].mxu1 %vm49_vm0, %v1281_v41  ;;  %368 = vrot.lane.b32.xlu0 %v360_v58, %s1156_s15  ;;  %v1073_v58 = vld [vmem:[%s1503_s4] sm:$0xff]  }
 0x3b1   :  { %1006 = vmatpush3.bf16.msra.mxu1 %v532_v59  ;;  %v499_v61 = vpop.permute.xlu1 %498  ;;  %1009 = vmatprep.mubr.msk.bf16.mxu1 %vm1159_vm1, %v1158_v15  ;;  %v353_v6 = vpop.permute.xlu0 %352  ;;  %v1074_v59 = vld [vmem:[%s1503_s4 + $0x8] sm:$0xff]  }
 0x3b2   :  { %v530_v63 = vsel %vm251_vm7, %v525_v60, %v499_v61  ;;  %1007 = vmatprep.subr.bf16.mxu1 %v1158_v15  ;;  %v362_v9 = vmul.bf16 %v353_v6, %v326_v48 }
 0x3b3   :  { %v533_v3 = vmul.bf16 %v1072_v33, %v530_v63 }
 0x3b4   :  { %593 = vrot.lane.b32.xlu0 %v585_v2, %s1156_s15 }
 0x3b5   :  { %1008 = vmatpush3.bf16.msra.mxu1 %v533_v3  ;;  %v351_v4 = vpop.permute.xlu1 %350 }
 0x3b6   :  { %v361_v5 = vmul.bf16 %v351_v4, %v326_v48  ;;  %1013 = vmatprep.subr.bf16.mxu1 %v1158_v15  ;;  %v586_v7 = vmul.bf16 %v1392_v62, %v351_v4 }
 0x3b8   :  { %1010 = vmatmul.mubr.msk.bf16.vlgmr.msra.gmra.mrb[4].mxu1 %vm49_vm0, %v1286_v42  ;;  %370 = vrot.lane.b32.xlu1 %v361_v5, %s1156_s15  ;;  %v587_v42 = vmul.bf16 %v1392_v62, %v353_v6  ;;  %v939_v6 = vld [vmem:[%s1504_s5] ss:$0 sm:$0xff]  ;;  %s1168_s5 = smov [#allocation6]  }
 0x3b9   :  { %378 = vrot.lane.b32.xlu0 %v1339_v51, %s1164_s10  ;;  %v355_v41 = vpop.permute.xlu1 %354  ;;  %1021 = vmatprep.mubr.msk.bf16.mxu1 %vm1159_vm1, %v1158_v15 }
 0x3ba   :  { %v588_v8 = vmul.bf16 %v1392_v62, %v355_v41  ;;  %v363_v51 = vmul.bf16 %v355_v41, %v326_v48 }
 0x3bc   :  { %595 = vrot.lane.b32.xlu1 %v586_v7, %s1156_s15 }
 0x3bd   :  { %372 = vrot.lane.b32.xlu0 %v362_v9, %s1156_s15  ;;  %v377_v10 = vpop.permute.xlu1 %376 }
 0x3c0   :  { %380 = vrot.lane.b32.xlu1 %v1331_v50, %s1164_s10 }
 0x3c1   :  { %597 = vrot.lane.b32.xlu0 %v587_v42, %s1156_s15 }
 0x3c4   :  { %374 = vrot.lane.b32.xlu1 %v363_v51, %s1156_s15 }
 0x422   :  { %v369_v11 = vpop.permute.xlu0 %368 }
 0x423   :  { %v386_v12 = vsel %vm49_vm0, %v369_v11, %v377_v10 }
 0x424   :  { %994 = vmatpush3.bf16.msra.mxu0 %v386_v12 }
 0x425   :  { %995 = vmatprep.subr.bf16.mxu0 %v1158_v15 }
 0x426   :  { %v594_v13 = vpop.permute.xlu0 %593 }
 0x427   :  { %v602_v14 = vsel %vm49_vm0, %v594_v13, %v377_v10 }
 0x428   :  { %1014 = vmatpush3.bf16.msra.mxu1 %v602_v14 }
 0x429   :  { %1015 = vmatprep.subr.bf16.mxu1 %v1158_v15 }
 0x42a   :  { %v371_v16 = vpop.permute.xlu1 %370 }
 0x42b   :  { %v379_v50 = vpop.permute.xlu0 %378 }
 0x42c   :  { %v390_v17 = vsel %vm49_vm0, %v371_v16, %v379_v50  ;;  %v734_v16 = vpack.c.bf16 %v1237_v1, %v1232_v0 }
 0x42d   :  { %996 = vmatpush3.bf16.msra.mxu0 %v390_v17 }
 0x42e   :  { %v596_v18 = vpop.permute.xlu1 %595  ;;  %997 = vmatprep.subr.bf16.mxu0 %v1158_v15 }
 0x42f   :  { %v605_v19 = vsel %vm49_vm0, %v596_v18, %v379_v50  ;;  %v373_v20 = vpop.permute.xlu0 %372 }
 0x430   :  { %1016 = vmatpush3.bf16.msra.mxu1 %v605_v19 }
 0x431   :  { %1017 = vmatprep.subr.bf16.mxu1 %v1158_v15 }
 0x432   :  { %v381_v21 = vpop.permute.xlu1 %380 }
 0x433   :  { %v394_v22 = vsel %vm49_vm0, %v373_v20, %v381_v21  ;;  %v598_v23 = vpop.permute.xlu0 %597 }
 0x434   :  { %v608_v24 = vsel %vm49_vm0, %v598_v23, %v381_v21  ;;  %998 = vmatpush3.bf16.msra.mxu0 %v394_v22 }
 0x435   :  { %1018 = vmatpush3.bf16.msra.mxu1 %v608_v24  ;;  %999 = vmatprep.subr.bf16.mxu0 %v1158_v15 }
 0x436   :  { %1019 = vmatprep.subr.bf16.mxu1 %v1158_v15  ;;  %v375_v44 = vpop.permute.xlu1 %374 }
 0x483   :  { %v309_v26 = vpop.f32.mrb[0].mxu1 }
 0x484   :  { %v315_v27 = vmul.f32 0.5, %v309_v26  ;;  %v991_v28 = vpop.f32.mrb[1].mxu1 }
 0x485   :  { %v312_v30 = vpop.f32.mrb[2].mxu1 }
 0x486   :  { %v992_v31 = vpop.f32.mrb[3].mxu1  ;;  %v317_v32 = vsel %vm316_vm9, %v315_v27, -inf }
 0x487   :  { %318 = vmax.xlane.f32.xlu0 %v317_v32 }
 0x48b   :  { %v570_v33 = vpop.f32.mrb[4].mxu1 }
 0x48c   :  { %v576_v34 = vmul.f32 0.5, %v570_v33  ;;  %v1011_v35 = vpop.f32.mrb[5].mxu1 }
 0x48d   :  { %v573_v36 = vpop.f32.mrb[6].mxu1 }
 0x48e   :  { %v1012_v37 = vpop.f32.mrb[7].mxu1  ;;  %v577_v38 = vsel %vm316_vm9, %v576_v34, -inf }
 0x48f   :  { %578 = vmax.xlane.f32.xlu1 %v577_v38 }
 0x49d   :  { %382 = vrot.lane.b32.xlu0 %v1346_v52, %s1164_s10 }
 0x4a0   :  { %599 = vrot.lane.b32.xlu1 %v588_v8, %s1156_s15 }
 0x514   :  { %v319_v39 = vpop.xlane.xlu0 %318 }
 0x515   :  { %v320_v40 = vsub.f32 %v315_v27, %v319_v39 }
 0x517   :  { %v321_v43 = vmul.f32 1.442695, %v320_v40 }
 0x518   :  { %v383_v45 = vpop.permute.xlu0 %382 }
 0x519   :  { %1079 = vpow2.f32 %v321_v43  ;;  %v398_v46 = vsel %vm49_vm0, %v375_v44, %v383_v45 }
 0x51a   :  { %1000 = vmatpush3.bf16.msra.mxu0 %v398_v46 }
 0x51b   :  { %1025 = vmatprep.subr.bf16.mxu0 %v1158_v15 }
 0x51c   :  { %v579_v47 = vpop.xlane.xlu1 %578 }
 0x51d   :  { %v580_v49 = vsub.f32 %v576_v34, %v579_v47 }
 0x51f   :  { %v581_v53 = vmul.f32 1.442695, %v580_v49 }
 0x520   :  { %v600_v54 = vpop.permute.xlu1 %599 }
 0x521   :  { %1081 = vpow2.f32 %v581_v53  ;;  %v611_v52 = vsel %vm49_vm0, %v600_v54, %v383_v45 }
 0x522   :  { %1020 = vmatpush3.bf16.msra.mxu1 %v611_v52 }
 0x523   :  { %v1080_v55 = vpop.eup %1079  ;;  %1041 = vmatprep.subr.bf16.mxu1 %v1158_v15 }
 0x524   :  { %v400_v56 = vpack.c.bf16 %v1080_v55, %v1080_v55 }
 0x526   :  { %1002 = vmatmul.mubr.msk.bf16.vlgmr.msra.gmra.mrb[4].mxu0 %vm316_vm9, %v400_v56 }
 0x527   :  { %1029 = vmatprep.mubr.msk.bf16.mxu0 %vm1159_vm1, %v1158_v15  ;;  %1026 = vmatpush3.bf16.msra.mxu0 %v1073_v58 }
 0x528   :  { %1027 = vmatprep.subr.bf16.mxu0 %v1158_v15 }
 0x52b   :  { %v1082_v48 = vpop.eup %1081  ;;  %1028 = vmatpush3.bf16.msra.mxu0 %v1074_v59 }
 0x52c   :  { %v613_v57 = vpack.c.bf16 %v1082_v48, %v1082_v48  ;;  %1033 = vmatprep.subr.bf16.mxu0 %v1158_v15 }
 0x52e   :  { %1022 = vmatmul.mubr.msk.bf16.vlgmr.msra.gmra.mrb[8].mxu1 %vm316_vm9, %v613_v57 }
 0x52f   :  { %1045 = vmatprep.mubr.msk.bf16.mxu1 %vm1159_vm1, %v1158_v15 }
 0x5f9   :  { %v438_v60 = vpop.f32.mrb[4].mxu0 }
 0x5fa   :  { %445 = vrot.lane.b32.xlu0 %v438_v60, %s1160_s1  ;;  %v1003_v61 = vpop.f32.mrb[5].mxu0 }
 0x5fb   :  { %v441_v62 = vpop.f32.mrb[6].mxu0 }
 0x5fc   :  { %v1004_v63 = vpop.f32.mrb[7].mxu0 }
 0x5fe   :  { %735 = vrot.lane.b32.xlu0 %v1073_v58, %s1160_s1 }
 0x601   :  { %v651_v2 = vpop.f32.mrb[8].mxu1 }
 0x602   :  { %658 = vrot.lane.b32.xlu1 %v651_v2, %s1160_s1  ;;  %v1023_v3 = vpop.f32.mrb[9].mxu1  ;;  %741 = vrot.lane.b32.xlu0 %v939_v6, %s1160_s1 }
 0x603   :  { %v654_v4 = vpop.f32.mrb[10].mxu1 }
 0x604   :  { %v1024_v5 = vpop.f32.mrb[11].mxu1 }
 0x606   :  { %737 = vrot.lane.b32.xlu1 %v1074_v59, %s1160_s1  ;;  %807 = vrot.lane.b32.xlu0 %v1074_v59, %s1156_s15 }
 0x60a   :  { %805 = vrot.lane.b32.xlu1 %v1073_v58, %s1156_s15 }
 0x60e   :  { %811 = vrot.lane.b32.xlu1 %v939_v6, %s1156_s15  ;;  %s911_s15 = sshll.u32 %s1168_s5, 4  ;;  %s912_s15 = int_to_ptr.vmem [resolvable:$true] %s911_s15 }
 0x60f   :  { %s1129_s2 = scalar_lea.vmem %s912_s15, 256  ;;  %p1134_p9 = scmp.lt.s32.totalorder %s912_s15, %s912_s15 }
 0x610   :  { %p1130_p8 = scmp.ne.s32.totalorder %s912_s15, %s1129_s2  ;;  %p1135_p10 = scmp.lt.s32.totalorder %s1129_s2, %s1129_s2 }
 0x612   :  { %p1136_p11 = por %p1135_p10, %p1134_p9 }
 0x614   :  { %p1137_p12 = pnand %p1136_p11, %p1130_p8 }
 0x66c   :  { %v446_v41 = vpop.permute.xlu0 %445 }
 0x66d   :  { %1083 = vrcp.f32 %v446_v41 }
 0x670   :  { %v736_v13 = vpop.permute.xlu0 %735 }
 0x674   :  { %v659_v7 = vpop.permute.xlu1 %658  ;;  %v742_v50 = vpop.permute.xlu0 %741 }
 0x675   :  { %1085 = vrcp.f32 %v659_v7 }
 0x677   :  { %v1084_v8 = vpop.eup %1083 }
 0x678   :  { %v449_v9 = vmul.f32 %v1084_v8, %v438_v60  ;;  %v738_v14 = vpop.permute.xlu1 %737  ;;  %v808_v18 = vpop.permute.xlu0 %807 }
 0x67a   :  { %450 = vst.msk [vmem:[#allocation2] sm:$0xff] %vm49_vm0, %v449_v9 }
 0x67c   :  { %v806_v17 = vpop.permute.xlu1 %805 }
 0x67d   :  { %1042 = vmatpush3.bf16.msra.mxu1 %v806_v17 }
 0x67e   :  { %1043 = vmatprep.subr.bf16.mxu1 %v1158_v15 }
 0x67f   :  { %v1086_v42 = vpop.eup %1085 }
 0x680   :  { %v662_v51 = vmul.f32 %v1086_v42, %v651_v2  ;;  %v812_v47 = vpop.permute.xlu1 %811 }
 0x681   :  { %v664_v10 = vld [vmem:[#allocation2] sm:$0xff]  ;;  %1044 = vmatpush3.bf16.msra.mxu1 %v808_v18 }
 0x682   :  { %663 = vst.msk [vmem:[#allocation2 + $0x8] sm:$0xff] %vm49_vm0, %v662_v51 }
 0x689   :  { %v665_v11 = vld [vmem:[#allocation2 + $0x8] sm:$0xff] }
 0x68a   :  { %v666_v12 = vpack.c.bf16 %v665_v11, %v664_v10 }
 0x68c   :  { %1030 = vmatmul.mubr.msk.bf16.vlgmr.msra.gmra.mrb[8].mxu0 %vm49_vm0, %v666_v12 }
 0x68d   :  { %1034 = vmatpush3.bf16.msra.mxu0 %v736_v13  ;;  %1037 = vmatprep.mubr.msk.bf16.mxu0 %vm1159_vm1, %v1158_v15 }
 0x68e   :  { %1035 = vmatprep.subr.bf16.mxu0 %v1158_v15 }
 0x691   :  { %1036 = vmatpush3.bf16.msra.mxu0 %v738_v14 }
 0x694   :  { %1038 = vmatmul.mubr.msk.bf16.vlgmr.msra.gmra.mrb[12].mxu0 %vm49_vm0, %v734_v16 }
 0x75f   :  { %v727_v19 = vpop.f32.mrb[8].mxu0 }
 0x760   :  { %v1031_v20 = vpop.f32.mrb[9].mxu0  ;;  %v728_v36 = vadd.f32 %v939_v6, %v727_v19 }
 0x761   :  { %v730_v21 = vpop.f32.mrb[10].mxu0 }
 0x762   :  { %v1032_v22 = vpop.f32.mrb[11].mxu0  ;;  %v731_v38 = vadd.f32 %v939_v6, %v730_v21 }
 0x767   :  { %v781_v23 = vpop.f32.mrb[12].mxu0 }
 0x768   :  { %v782_v24 = vadd.f32 %v781_v23, %v742_v50  ;;  %v1039_v26 = vpop.f32.mrb[13].mxu0 }
 0x769   :  { %v784_v27 = vpop.f32.mrb[14].mxu0 }
 0x76a   :  { %v944_v28 = vmul.f32 -1.442695, %v782_v24  ;;  %v785_v30 = vadd.f32 %v784_v27, %v742_v50  ;;  %v1040_v31 = vpop.f32.mrb[15].mxu0 }
 0x76c   :  { %1087 = vpow2.f32 %v944_v28  ;;  %v945_v32 = vmul.f32 -1.442695, %v785_v30 }
 0x76e   :  { %1089 = vpow2.f32 %v945_v32 }
 0x776   :  { %v1088_v33 = vpop.eup %1087 }
 0x777   :  { %v794_v34 = vadd.f32 1.0, %v1088_v33 }
 0x778   :  { %v1090_v35 = vpop.eup %1089 }
 0x779   :  { %1091 = vrcp.f32 %v794_v34  ;;  %v795_v15 = vadd.f32 1.0, %v1090_v35 }
 0x77b   :  { %1093 = vrcp.f32 %v795_v15 }
 0x783   :  { %v1092_v37 = vpop.eup %1091 }
 0x784   :  { %v800_v39 = vmul.f32 %v1092_v37, %v728_v36 }
 0x785   :  { %v1094_v40 = vpop.eup %1093 }
 0x786   :  { %v801_v43 = vmul.f32 %v1094_v40, %v731_v38  ;;  %v802_v44 = vadd.f32 %v800_v39, %v1232_v0 }
 0x788   :  { %v803_v45 = vadd.f32 %v801_v43, %v1237_v1 }
 0x78a   :  { %v804_v46 = vpack.c.bf16 %v803_v45, %v802_v44 }
 0x78c   :  { %1046 = vmatmul.mubr.msk.bf16.vlgmr.msra.gmra.mrb[12].mxu1 %vm49_vm0, %v804_v46 }
 0x85f   :  { %v851_v49 = vpop.f32.mrb[12].mxu1 }
 0x860   :  { %v852_v53 = vadd.f32 %v851_v49, %v812_v47  ;;  %v1047_v54 = vpop.f32.mrb[13].mxu1 }
 0x861   :  { %v854_v52 = vpop.f32.mrb[14].mxu1 }
 0x862   :  { %v947_v55 = vmul.f32 -1.442695, %v852_v53  ;;  %v855_v56 = vadd.f32 %v854_v52, %v812_v47  ;;  %v1048_v48 = vpop.f32.mrb[15].mxu1 }
 0x864   :  { %1095 = vpow2.f32 %v947_v55  ;;  %v948_v57 = vmul.f32 -1.442695, %v855_v56 }
 0x866   :  { %1097 = vpow2.f32 %v948_v57 }
 0x86e   :  { %v1096_v58 = vpop.eup %1095 }
 0x86f   :  { %v864_v59 = vadd.f32 1.0, %v1096_v58 }
 0x870   :  { %v1098_v60 = vpop.eup %1097 }
 0x871   :  { %1099 = vrcp.f32 %v864_v59  ;;  %v865_v0 = vadd.f32 1.0, %v1098_v60 }
 0x873   :  { %1101 = vrcp.f32 %v865_v0 }
 0x87b   :  { %v1100_v1 = vpop.eup %1099 }
 0x87c   :  { %v870_v61 = vsel %vm49_vm0, %v1100_v1, 0.0 }
 0x87d   :  { %v1102_v62 = vpop.eup %1101  ;;  %871 = vadd.xlane.f32.xlu0 %v870_v61 }
 0x87e   :  { %v873_v63 = vsel %vm49_vm0, %v1102_v62, 0.0 }
 0x87f   :  { %874 = vadd.xlane.f32.xlu1 %v873_v63 }
 0x90a   :  { %v872_v2 = vpop.xlane.xlu0 %871 }
 0x90b   :  { %v876_v3 = vmul.f32 0.03125, %v872_v2 }
 0x90c   :  { %v875_v4 = vpop.xlane.xlu1 %874 }
 0x90d   :  { %v878_v5 = vsub.f32 %v1100_v1, %v876_v3  ;;  %v877_v6 = vmul.f32 0.03125, %v875_v4 }
 0x90f   :  { %v879_v41 = vsub.f32 %v1102_v62, %v877_v6  ;;  %v880_v7 = vmul.f32 %v878_v5, %v878_v5 }
 0x911   :  { %v882_v8 = vsel %vm49_vm0, %v880_v7, 0.0  ;;  %v881_v9 = vmul.f32 %v879_v41, %v879_v41 }
 0x912   :  { %883 = vadd.xlane.f32.xlu0 %v882_v8 }
 0x913   :  { %v885_v42 = vsel %vm49_vm0, %v881_v9, 0.0 }
 0x916   :  { %886 = vadd.xlane.f32.xlu0 %v885_v42 }
 0x99f   :  { %v884_v51 = vpop.xlane.xlu0 %883 }
 0x9a0   :  { %v888_v10 = vmul.f32 0.03125, %v884_v51 }
 0x9a2   :  { %v890_v11 = vadd.f32 1e-05, %v888_v10 }
 0x9a3   :  { %v887_v12 = vpop.xlane.xlu0 %886 }
 0x9a4   :  { %1103 = vrsqrt.f32 %v890_v11  ;;  %v889_v13 = vmul.f32 0.03125, %v887_v12 }
 0x9a6   :  { %v891_v14 = vadd.f32 1e-05, %v889_v13 }
 0x9a8   :  { %1105 = vrsqrt.f32 %v891_v14 }
 0x9ae   :  { %v1104_v16 = vpop.eup %1103 }
 0x9af   :  { %v894_v50 = vmul.f32 %v1104_v16, %v878_v5 }
 0x9b1   :  { %v896_v17 = vmul.f32 %v1264_v25, %v894_v50 }
 0x9b2   :  { %v1106_v18 = vpop.eup %1105 }
 0x9b3   :  { %v898_v19 = vadd.f32 %v1270_v29, %v896_v17  ;;  %v895_v20 = vmul.f32 %v1106_v18, %v879_v41 }
 0x9b5   :  { %v897_v21 = vmul.f32 %v1264_v25, %v895_v20  ;;  %v900_v22 = vmul.f32 %v898_v19, %v802_v44 }
 0x9b7   :  { %v899_v23 = vadd.f32 %v1270_v29, %v897_v21  ;;  %v902_v24 = vadd.f32 %v900_v22, %v802_v44 }
 0x9b9   :  { %v901_v26 = vmul.f32 %v899_v23, %v803_v45  ;;  %904 = vst.msk [vmem:[#allocation6] sm:$0xff] %vm49_vm0, %v902_v24 }
 0x9bb   :  { %v903_v27 = vadd.f32 %v901_v26, %v803_v45 }
 0x9bd   :  { %905 = vst.msk [vmem:[#allocation6 + $0x8] sm:$0xff] %vm49_vm0, %v903_v27 }
 0x9be   :  { %1140 = shalt.err (!%p1137_p12)
}
 0x9bf   :  { %s1141_s27 = scalar_lea.hbm %s1507_s8, 256 }
 0x9c0   :  { %p1142_p13 = scmp.ne.s32.totalorder %s1507_s8, %s1141_s27  ;;  %p1145_p0 = scmp.lt.u32.totalorder %s1141_s27, %s1507_s8 }
 0x9c2   :  { %p1147_p1 = pnand %p1145_p0, %p1142_p13 }
 0x9c4   :  { %1150 = shalt.err (!%p1147_p1)
}
 0x9c5   :  { %s1169_s9 = smov 128  }
 0x9c6   :  { %917 = dma.vmem_to_hbm [thread:$0]  %s912_s15, 256, %s1507_s8, [#allocation5], %s1169_s9, %s1169_s9, %s1162_s30  }
 0x9c7   :  { %1153 = dma.done.wait [#allocation5], 256  }
 0x9c8   :  { %1154 = vsyncadd [#allocation5], 4294967040 }
 0x9c9   :  { %921 = vsyncpa [#allocation4], 1 }
 0x9ca   :  { %922 = vsyncpa [#allocation5], 1 }

</bundles_post_ra>
